<compile_context>
chip_gen: v7x
topology: tpu7x:2x2x1
jax: 0.10.0
libtpu: 0.0.40
codegen_flags: <defaults>
</compile_context>

<pallas_src>
import functools
import math

import jax
import jax.numpy as jnp
from jax.experimental import pallas as pl
from jax.experimental.pallas import tpu as pltpu


def _round_up(x, m):
    return (x + m - 1) // m * m


def _disc_kernel(has_label, *refs):
    if has_label:
        (x_img_ref, x_lab_ref, w1i_ref, w1l_ref, b1_ref,
         w2_ref, b2_ref, w3_ref, b3_ref, o_ref) = refs
    else:
        (x_img_ref, w1i_ref, b1_ref,
         w2_ref, b2_ref, w3_ref, b3_ref, o_ref) = refs
        x_lab_ref = w1l_ref = None

    # ---- Layer 1: h1 = xi @ w1i (+ xl @ w1l) + b1 ; LeakyReLU(0.2) -------------
    xi = x_img_ref[...].astype(jnp.bfloat16)
    h1 = jnp.dot(xi, w1i_ref[...], preferred_element_type=jnp.float32)
    if has_label:
        xl = x_lab_ref[...].astype(jnp.bfloat16)
        h1 = h1 + jnp.dot(xl, w1l_ref[...], preferred_element_type=jnp.float32)
    h1 = h1 + b1_ref[...]
    h1 = jnp.where(h1 > 0, h1, 0.2 * h1)          # LeakyReLU(0.2), f32 on VPU

    # ---- Layer 2 ----------------------------------------------------------------
    h2 = jnp.dot(h1.astype(jnp.bfloat16), w2_ref[...],
                 preferred_element_type=jnp.float32) + b2_ref[...]
    h2 = jnp.where(h2 > 0, h2, 0.2 * h2)

    # ---- Layer 3 (lane-dense): contract last dims of w3 (8, H) and h2 (TILE_B, H)
    # -> (8, TILE_B); only row 0 of w3 is live.  Batch ends up on the lane axis so
    # the output store is an unmasked, 128-wide vst.
    logits = jax.lax.dot_general(
        w3_ref[...], h2,
        dimension_numbers=(((1,), (1,)), ((), ())),
        preferred_element_type=jnp.float32)
    logit = logits[0:1, :] + b3_ref[0, 0]

    # Sigmoid: exp and (approx) reciprocal both land on the EUP slot.
    o_ref[...] = pl.reciprocal(1.0 + jnp.exp(-logit), approx=True)


def discriminator_forward(params, image, labels=None, *, tile_b=None):
    """Forward pass equivalent to Discriminator.forward.

    image : [B, img_size] float32 (or bfloat16)
    labels: [B] int32 or None
    returns [B, 1] float32 sigmoid probabilities.
    """
    B, d_img = image.shape
    has_label = labels is not None and params.get("embed") is not None

    if tile_b is None:
        # Lane-dense multiple of 128; capped so double-buffered x tiles stay far
        # under v7x's 64 MiB VMEM (512*784*4B*2 ~= 3.2 MB + ~0.3 MB resident weights).
        tile_b = min(512, _round_up(max(B, 1), 128))
    b_pad = _round_up(B, tile_b)

    x_img = image if b_pad == B else jnp.pad(image, ((0, b_pad - B), (0, 0)))
    if has_label:
        # nn.Embedding lookup (plain-JAX gather glue).
        x_lab = jnp.take(params["embed"], labels, axis=0)
        if b_pad != B:
            x_lab = jnp.pad(x_lab, ((0, b_pad - B), (0, 0)))

    h_pad = params["w2"].shape[0]
    grid = (b_pad // tile_b,)

    in_specs = [pl.BlockSpec((tile_b, d_img), lambda i: (i, 0))]      # x_img (streamed)
    args = [x_img]
    if has_label:
        d_lab = x_lab.shape[1]
        in_specs.append(pl.BlockSpec((tile_b, d_lab), lambda i: (i, 0)))  # x_lab (streamed)
        args.append(x_lab)

    in_specs.append(pl.BlockSpec((d_img, h_pad), lambda i: (0, 0)))   # w1_img (resident)
    args.append(params["w1_img"])
    if has_label:
        in_specs.append(
            pl.BlockSpec((params["w1_lab"].shape[0], h_pad), lambda i: (0, 0)))
        args.append(params["w1_lab"])

    in_specs += [
        pl.BlockSpec((1, h_pad), lambda i: (0, 0)),                   # b1
        pl.BlockSpec((h_pad, h_pad), lambda i: (0, 0)),               # w2
        pl.BlockSpec((1, h_pad), lambda i: (0, 0)),                   # b2
        pl.BlockSpec((8, h_pad), lambda i: (0, 0)),                   # w3 slab (row 0 live)
        pl.BlockSpec((1, 1), lambda i: (0, 0),
                     memory_space=pltpu.MemorySpace.SMEM),            # b3 scalar
    ]
    args += [params["b1"], params["w2"], params["b2"], params["w3"], params["b3"]]

    d_in = d_img + (x_lab.shape[1] if has_label else 0)
    flops = 2 * b_pad * (d_in * h_pad + h_pad * h_pad + h_pad)
    bytes_accessed = sum(int(a.size) * a.dtype.itemsize for a in args) + b_pad * 4

    out = pl.pallas_call(
        functools.partial(_disc_kernel, has_label),
        out_shape=jax.ShapeDtypeStruct((1, b_pad), jnp.float32),
        grid=grid,
        in_specs=in_specs,
        out_specs=pl.BlockSpec((1, tile_b), lambda i: (0, i)),
        compiler_params=pltpu.CompilerParams(
            dimension_semantics=("parallel",),
            vmem_limit_bytes=32 * 1024 * 1024),
        cost_estimate=pl.CostEstimate(
            flops=flops, transcendentals=b_pad, bytes_accessed=bytes_accessed),
    )(*args)

    out = out.reshape(b_pad, 1)
    return out[:B] if b_pad != B else out


def init_params(key, img_size, hidden_size, label_num=None, label_dim=None):
    """Torch-default-like init, stored in kernel layout:
       * Linear weights transposed ([in, out]), hidden dim zero-padded to a multiple
         of 128; w1 pre-split into image/label parts; w1/w2 in bf16.
       * w3 stored as an (8, H_pad) f32 slab whose row 0 holds the real weights.
    """
    conditional = label_num is not None and label_dim is not None
    in_dim = img_size + (label_dim if conditional else 0)
    h_pad = _round_up(hidden_size, 128)

    keys = jax.random.split(key, 7)

    def lin(kw, kb, fan_in, fan_out):
        bound = 1.0 / math.sqrt(fan_in)
        w = jax.random.uniform(kw, (fan_in, fan_out), jnp.float32, -bound, bound)
        b = jax.random.uniform(kb, (fan_out,), jnp.float32, -bound, bound)
        return w, b

    w1, b1 = lin(keys[0], keys[1], in_dim, hidden_size)
    w2, b2 = lin(keys[2], keys[3], hidden_size, hidden_size)
    w3, b3 = lin(keys[4], keys[5], hidden_size, 1)

    pad_h = h_pad - hidden_size
    params = {
        "w1_img": jnp.pad(w1[:img_size], ((0, 0), (0, pad_h))).astype(jnp.bfloat16),
        "b1": jnp.pad(b1, (0, pad_h)).reshape(1, h_pad),
        "w2": jnp.pad(w2, ((0, pad_h), (0, pad_h))).astype(jnp.bfloat16),
        "b2": jnp.pad(b2, (0, pad_h)).reshape(1, h_pad),
        "w3": jnp.pad(w3.T, ((0, 7), (0, pad_h))),    # (8, h_pad), row 0 live
        "b3": b3.reshape(1, 1),
        "embed": None,
    }
    if conditional:
        params["w1_lab"] = jnp.pad(
            w1[img_size:], ((0, 0), (0, pad_h))).astype(jnp.bfloat16)
        # nn.Embedding default init: N(0, 1)
        params["embed"] = jax.random.normal(
            keys[6], (label_num, label_dim), jnp.float32)
    return params


def _reference_forward(params, image, labels=None):
    """Pure-JAX f32 reference matching the torch module (for self-check)."""
    h1 = image.astype(jnp.float32) @ params["w1_img"].astype(jnp.float32)
    if labels is not None and params.get("embed") is not None:
        emb = jnp.take(params["embed"], labels, axis=0)
        h1 = h1 + emb @ params["w1_lab"].astype(jnp.float32)
    h1 = h1 + params["b1"]
    h1 = jnp.where(h1 > 0, h1, 0.2 * h1)
    h2 = h1 @ params["w2"].astype(jnp.float32) + params["b2"]
    h2 = jnp.where(h2 > 0, h2, 0.2 * h2)
    logit = h2 @ params["w3"][0] + params["b3"][0, 0]
    return jax.nn.sigmoid(logit).reshape(-1, 1)


if __name__ == "__main__":
    batch = 8
    img_size = 784          # 1 * 28 * 28, per the module docstring
    hidden_size = 64
    label_num = 10
    label_dim = 16

    key = jax.random.PRNGKey(0)
    k_params, k_img, k_lab = jax.random.split(key, 3)

    image = jax.random.normal(k_img, (batch, img_size), jnp.float32)
    labels = jax.random.randint(k_lab, (batch,), 0, label_num, jnp.int32)

    # Conditional path (label embedding + split first matmul).
    params_c = init_params(k_params, img_size, hidden_size, label_num, label_dim)
    out_c = jax.block_until_ready(discriminator_forward(params_c, image, labels))
    assert out_c.shape == (batch, 1)
    assert bool(jnp.all((out_c >= 0.0) & (out_c <= 1.0)))
    ref_c = _reference_forward(params_c, image, labels)
    assert bool(jnp.all(jnp.abs(out_c - ref_c) < 5e-2)), "conditional mismatch"

    # Unconditional path (no labels).
    params_u = init_params(k_params, img_size, hidden_size)
    out_u = jax.block_until_ready(discriminator_forward(params_u, image))
    assert out_u.shape == (batch, 1)
    ref_u = _reference_forward(params_u, image)
    assert bool(jnp.all(jnp.abs(out_u - ref_u) < 5e-2)), "unconditional mismatch"

    print("KERNEL_OK")
</pallas_src>

<mosaic_0001>
module attributes {stable_mosaic.version = 11 : i64} {
  func.func @_disc_kernel(%arg0: i32, %arg1: memref<128x784xf32, #tpu.memory_space<vmem>>, %arg2: memref<128x16xf32, #tpu.memory_space<vmem>>, %arg3: memref<784x128xbf16, #tpu.memory_space<vmem>>, %arg4: memref<16x128xbf16, #tpu.memory_space<vmem>>, %arg5: memref<1x128xf32, #tpu.memory_space<vmem>>, %arg6: memref<128x128xbf16, #tpu.memory_space<vmem>>, %arg7: memref<1x128xf32, #tpu.memory_space<vmem>>, %arg8: memref<8x128xf32, #tpu.memory_space<vmem>>, %arg9: memref<1x1xf32, #tpu.memory_space<smem>>, %arg10: memref<1x128xf32, #tpu.memory_space<vmem>>) attributes {dimension_semantics = [#tpu.dimension_semantics<parallel>], iteration_bounds = array<i64: 1>, scalar_prefetch = 0 : i64, scratch_operands = 0 : i64, tpu.core_type = #tpu.core_type<tc>, window_params = [{transform_indices = @transform_0, window_bounds = array<i64: 128, 784>}, {transform_indices = @transform_1, window_bounds = array<i64: 128, 16>}, {pipeline_mode = #tpu.pipeline_mode<synchronous>, transform_indices = @transform_2, window_bounds = array<i64: 784, 128>}, {pipeline_mode = #tpu.pipeline_mode<synchronous>, transform_indices = @transform_3, window_bounds = array<i64: 16, 128>}, {pipeline_mode = #tpu.pipeline_mode<synchronous>, transform_indices = @transform_4, window_bounds = array<i64: 1, 128>}, {pipeline_mode = #tpu.pipeline_mode<synchronous>, transform_indices = @transform_5, window_bounds = array<i64: 128, 128>}, {pipeline_mode = #tpu.pipeline_mode<synchronous>, transform_indices = @transform_6, window_bounds = array<i64: 1, 128>}, {pipeline_mode = #tpu.pipeline_mode<synchronous>, transform_indices = @transform_7, window_bounds = array<i64: 8, 128>}, {transform_indices = @transform_8, window_bounds = array<i64: 1, 1>}, {transform_indices = @transform_9, window_bounds = array<i64: 1, 128>}]} {
    %c0 = arith.constant 0 : index
    %c0_0 = arith.constant 0 : index
    %0 = vector.load %arg1[%c0, %c0_0] : memref<128x784xf32, #tpu.memory_space<vmem>>, vector<128x784xf32>
    %1 = arith.truncf %0 : vector<128x784xf32> to vector<128x784xbf16>
    %c0_1 = arith.constant 0 : index
    %c0_2 = arith.constant 0 : index
    %2 = vector.load %arg3[%c0_1, %c0_2] : memref<784x128xbf16, #tpu.memory_space<vmem>>, vector<784x128xbf16>
    %cst = arith.constant dense<0.000000e+00> : vector<128x128xf32>
    %3 = tpu.matmul %1, %2, %cst {dimension_numbers = #tpu.dot_dimension_numbers<[1], [0], [0], [1], [0, 0, 1, 1], [], []>} : vector<128x784xbf16>, vector<784x128xbf16>, vector<128x128xf32> -> vector<128x128xf32>
    %c0_3 = arith.constant 0 : index
    %c0_4 = arith.constant 0 : index
    %4 = vector.load %arg2[%c0_3, %c0_4] : memref<128x16xf32, #tpu.memory_space<vmem>>, vector<128x16xf32>
    %5 = arith.truncf %4 : vector<128x16xf32> to vector<128x16xbf16>
    %c0_5 = arith.constant 0 : index
    %c0_6 = arith.constant 0 : index
    %6 = vector.load %arg4[%c0_5, %c0_6] : memref<16x128xbf16, #tpu.memory_space<vmem>>, vector<16x128xbf16>
    %cst_7 = arith.constant dense<0.000000e+00> : vector<128x128xf32>
    %7 = tpu.matmul %5, %6, %cst_7 {dimension_numbers = #tpu.dot_dimension_numbers<[1], [0], [0], [1], [0, 0, 1, 1], [], []>} : vector<128x16xbf16>, vector<16x128xbf16>, vector<128x128xf32> -> vector<128x128xf32>
    %8 = arith.addf %3, %7 : vector<128x128xf32>
    %c0_8 = arith.constant 0 : index
    %c0_9 = arith.constant 0 : index
    %9 = vector.load %arg5[%c0_8, %c0_9] : memref<1x128xf32, #tpu.memory_space<vmem>>, vector<1x128xf32>
    %10 = vector.broadcast %9 : vector<1x128xf32> to vector<128x128xf32>
    %11 = arith.addf %8, %10 : vector<128x128xf32>
    %cst_10 = arith.constant 0.000000e+00 : f32
    %12 = vector.broadcast %cst_10 : f32 to vector<128x128xf32>
    %13 = arith.cmpf ogt, %11, %12 : vector<128x128xf32>
    %cst_11 = arith.constant 2.000000e-01 : f32
    %14 = vector.broadcast %cst_11 : f32 to vector<128x128xf32>
    %15 = arith.mulf %14, %11 : vector<128x128xf32>
    %16 = arith.select %13, %11, %15 : vector<128x128xi1>, vector<128x128xf32>
    %17 = arith.truncf %16 : vector<128x128xf32> to vector<128x128xbf16>
    %c0_12 = arith.constant 0 : index
    %c0_13 = arith.constant 0 : index
    %18 = vector.load %arg6[%c0_12, %c0_13] : memref<128x128xbf16, #tpu.memory_space<vmem>>, vector<128x128xbf16>
    %cst_14 = arith.constant dense<0.000000e+00> : vector<128x128xf32>
    %19 = tpu.matmul %17, %18, %cst_14 {dimension_numbers = #tpu.dot_dimension_numbers<[1], [0], [0], [1], [0, 0, 1, 1], [], []>} : vector<128x128xbf16>, vector<128x128xbf16>, vector<128x128xf32> -> vector<128x128xf32>
    %c0_15 = arith.constant 0 : index
    %c0_16 = arith.constant 0 : index
    %20 = vector.load %arg7[%c0_15, %c0_16] : memref<1x128xf32, #tpu.memory_space<vmem>>, vector<1x128xf32>
    %21 = vector.broadcast %20 : vector<1x128xf32> to vector<128x128xf32>
    %22 = arith.addf %19, %21 : vector<128x128xf32>
    %cst_17 = arith.constant 0.000000e+00 : f32
    %23 = vector.broadcast %cst_17 : f32 to vector<128x128xf32>
    %24 = arith.cmpf ogt, %22, %23 : vector<128x128xf32>
    %cst_18 = arith.constant 2.000000e-01 : f32
    %25 = vector.broadcast %cst_18 : f32 to vector<128x128xf32>
    %26 = arith.mulf %25, %22 : vector<128x128xf32>
    %27 = arith.select %24, %22, %26 : vector<128x128xi1>, vector<128x128xf32>
    %c0_19 = arith.constant 0 : index
    %c0_20 = arith.constant 0 : index
    %28 = vector.load %arg8[%c0_19, %c0_20] : memref<8x128xf32, #tpu.memory_space<vmem>>, vector<8x128xf32>
    %cst_21 = arith.constant dense<0.000000e+00> : vector<8x128xf32>
    %29 = tpu.matmul %28, %27, %cst_21 {dimension_numbers = #tpu.dot_dimension_numbers<[1], [1], [0], [0], [0, 0, 1, 0], [], []>} : vector<8x128xf32>, vector<128x128xf32>, vector<8x128xf32> -> vector<8x128xf32>
    %30 = vector.extract_strided_slice %29 {offsets = [0, 0], sizes = [1, 128], strides = [1, 1]} : vector<8x128xf32> to vector<1x128xf32>
    %c0_22 = arith.constant 0 : index
    %c0_23 = arith.constant 0 : index
    %31 = memref.load %arg9[%c0_22, %c0_23] : memref<1x1xf32, #tpu.memory_space<smem>>
    %32 = vector.broadcast %31 : f32 to vector<1x128xf32>
    %33 = arith.addf %30, %32 : vector<1x128xf32>
    %cst_24 = arith.constant 0.000000e+00 : f32
    %34 = vector.broadcast %cst_24 : f32 to vector<1x128xf32>
    %35 = arith.subf %34, %33 : vector<1x128xf32>
    %36 = math.exp %35 : vector<1x128xf32>
    %cst_25 = arith.constant 1.000000e+00 : f32
    %37 = vector.broadcast %cst_25 : f32 to vector<1x128xf32>
    %38 = arith.addf %37, %36 : vector<1x128xf32>
    %39 = tpu.reciprocal %38 {approx = true} : vector<1x128xf32> -> vector<1x128xf32>
    %c0_26 = arith.constant 0 : index
    %c0_27 = arith.constant 0 : index
    %40 = vector.load %arg10[%c0_26, %c0_27] : memref<1x128xf32, #tpu.memory_space<vmem>>, vector<1x128xf32>
    tpu.vector_store %arg10[%c0_26, %c0_27], %39 {strides = array<i32>} : memref<1x128xf32, #tpu.memory_space<vmem>>, vector<1x128xf32>,
    return
  }
  func.func @transform_0(%arg0: i32) -> (i32, i32) {
    %c0_i32 = arith.constant 0 : i32
    %c0_i32_0 = arith.constant 0 : i32
    return %arg0, %c0_i32 : i32, i32
  }
  func.func @transform_1(%arg0: i32) -> (i32, i32) {
    %c0_i32 = arith.constant 0 : i32
    %c0_i32_0 = arith.constant 0 : i32
    return %arg0, %c0_i32 : i32, i32
  }
  func.func @transform_2(%arg0: i32) -> (i32, i32) {
    %c0_i32 = arith.constant 0 : i32
    %c0_i32_0 = arith.constant 0 : i32
    %c0_i32_1 = arith.constant 0 : i32
    return %c0_i32, %c0_i32_0 : i32, i32
  }
  func.func @transform_3(%arg0: i32) -> (i32, i32) {
    %c0_i32 = arith.constant 0 : i32
    %c0_i32_0 = arith.constant 0 : i32
    %c0_i32_1 = arith.constant 0 : i32
    return %c0_i32, %c0_i32_0 : i32, i32
  }
  func.func @transform_4(%arg0: i32) -> (i32, i32) {
    %c0_i32 = arith.constant 0 : i32
    %c0_i32_0 = arith.constant 0 : i32
    %c0_i32_1 = arith.constant 0 : i32
    return %c0_i32, %c0_i32_0 : i32, i32
  }
  func.func @transform_5(%arg0: i32) -> (i32, i32) {
    %c0_i32 = arith.constant 0 : i32
    %c0_i32_0 = arith.constant 0 : i32
    %c0_i32_1 = arith.constant 0 : i32
    return %c0_i32, %c0_i32_0 : i32, i32
  }
  func.func @transform_6(%arg0: i32) -> (i32, i32) {
    %c0_i32 = arith.constant 0 : i32
    %c0_i32_0 = arith.constant 0 : i32
    %c0_i32_1 = arith.constant 0 : i32
    return %c0_i32, %c0_i32_0 : i32, i32
  }
  func.func @transform_7(%arg0: i32) -> (i32, i32) {
    %c0_i32 = arith.constant 0 : i32
    %c0_i32_0 = arith.constant 0 : i32
    %c0_i32_1 = arith.constant 0 : i32
    return %c0_i32, %c0_i32_0 : i32, i32
  }
  func.func @transform_8(%arg0: i32) -> (i32, i32) {
    %c0_i32 = arith.constant 0 : i32
    %c0_i32_0 = arith.constant 0 : i32
    %c0_i32_1 = arith.constant 0 : i32
    return %c0_i32, %c0_i32_0 : i32, i32
  }
  func.func @transform_9(%arg0: i32) -> (i32, i32) {
    %c0_i32 = arith.constant 0 : i32
    %c0_i32_0 = arith.constant 0 : i32
    return %c0_i32, %arg0 : i32, i32
  }
}

</mosaic_0001>

<bundles_post_ra>
// kernel: tpu_custom_call.1
= control target key start
LH: loop header
LB: loop body
LE: loop exit
PB: predicated region body
PF: predicated region fallthrough
CT: control target
= control target key end

     0   :  { %vm333_vm0 = vcmask 130048   ;;  %s2906_s0 = inlined_call_operand.vmem [shape: f32[128,784], index: 0, kind: input, shape index: {}]   ;;  %s2907_s1 = inlined_call_operand.vmem [shape: f32[128,16], index: 1, kind: input, shape index: {}]   ;;  %s2908_s2 = inlined_call_operand.vmem [shape: bf16[784,128], index: 2, kind: input, shape index: {}]   ;;  %s2909_s3 = inlined_call_operand.vmem [shape: bf16[16,128], index: 3, kind: input, shape index: {}]   ;;  %s2910_s4 = inlined_call_operand.vmem [shape: f32[1,128], index: 4, kind: input, shape index: {}]   ;;  %s2911_s5 = inlined_call_operand.vmem [shape: bf16[128,128], index: 5, kind: input, shape index: {}]   ;;  %s2912_s6 = inlined_call_operand.vmem [shape: f32[1,128], index: 6, kind: input, shape index: {}]   ;;  %s2913_s7 = inlined_call_operand.vmem [shape: f32[8,128], index: 7, kind: input, shape index: {}]   ;;  %s2914_s8 = inlined_call_operand.<no memory space> [shape: f32[1,1], index: 8, kind: input, shape index: {}]   ;;  %s2915_s9 = inlined_call_operand.hbm [shape: f32[1,128], index: 9, kind: output, shape index: {}]  }
   0x1   :  { %v2064_v0 = vld [vmem:[%s2909_s3] sm:$0xff]   ;;  %v302_v4 = vld [vmem:[%s2907_s1 + $0x8] sm:$0xff]  ;;  %v303_v5 = vld [vmem:[%s2907_s1 + $0x10] sm:$0xff] }
   0x2   :  { %v2065_v1 = vld [vmem:[%s2908_s2 + $0x40] sm:$0xff]   ;;  %1869 = vmatprep.subr.bf16.mxu0 %v2064_v0  ;;  %v304_v7 = vld [vmem:[%s2907_s1 + $0x18] sm:$0xff]  ;;  %v2067_v9 = vld [vmem:[%s2908_s2 + $0x48] sm:$0xff]  }
   0x3   :  { %v2066_v2 = vld [vmem:[%s2908_s2] sm:$0xff]   ;;  %1635 = vmatprep.subr.bf16.mxu1 %v2065_v1  ;;  %1870 = vmatpush3.bf16.msra.mxu0 %v2064_v0  ;;  %v318_v8 = vpack.c.bf16 %v304_v7, %v303_v5  ;;  %v2069_v11 = vld [vmem:[%s2908_s2 + $0x8] sm:$0xff]   ;;  %v2071_v13 = vld [vmem:[%s2908_s2 + $0x50] sm:$0xff]  }
   0x4   :  { %v301_v3 = vld [vmem:[%s2907_s1] sm:$0xff]  ;;  %1636 = vmatpush3.bf16.msra.mxu1 %v2066_v2  ;;  %v2072_v14 = vld [vmem:[%s2908_s2 + $0xc8] sm:$0xff]   ;;  %v2073_v15 = vld [vmem:[%s2908_s2 + $0x10] sm:$0xff]  }
   0x5   :  { %v317_v6 = vpack.c.bf16 %v302_v4, %v301_v3  ;;  %v2068_v10 = vld [vmem:[%s2908_s2 + $0xc0] sm:$0xff]   ;;  %1637 = vmatprep.subr.bf16.mxu1 %v2067_v9  ;;  %v2074_v16 = vld [vmem:[%s2908_s2 + $0x88] sm:$0xff]   ;;  %v307_v20 = vld [vmem:[%s2907_s1 + $0x30] sm:$0xff] }
   0x6   :  { %1699 = vmatprep.subr.bf16.mxu0 %v2068_v10  ;;  %v2070_v12 = vld [vmem:[%s2908_s2 + $0x80] sm:$0xff]   ;;  %v306_v18 = vld [vmem:[%s2907_s1 + $0x28] sm:$0xff]  ;;  %v308_v21 = vld [vmem:[%s2907_s1 + $0x38] sm:$0xff] }
   0x7   :  { %1871 = vmatprep.mubr.msk.bf16.mxu0 %vm333_vm0, %v317_v6  ;;  %v305_v17 = vld [vmem:[%s2907_s1 + $0x20] sm:$0xff]  ;;  %v320_v22 = vpack.c.bf16 %v308_v21, %v307_v20  ;;  %v2075_v23 = vld [vmem:[%s2908_s2 + $0x58] sm:$0xff]   ;;  %v2076_v24 = vld [vmem:[%s2908_s2 + $0xd0] sm:$0xff]  }
   0x8   :  { %1872 = vmatmul.mubr.msk.bf16.vlgmr.msra.gmra.mrb[0].mxu0 %vm333_vm0, %v318_v8  ;;  %1638 = vmatpush3.bf16.msra.mxu1 %v2069_v11  ;;  %v319_v19 = vpack.c.bf16 %v306_v18, %v305_v17  ;;  %v2077_v25 = vld [vmem:[%s2908_s2 + $0x18] sm:$0xff]   ;;  %v2078_v26 = vld [vmem:[%s2908_s2 + $0x90] sm:$0xff]   ;;  %v2079_v27 = vld [vmem:[%s2908_s2 + $0x60] sm:$0xff]  }
   0x9   :  { %1700 = vmatpush3.bf16.msra.mxu0 %v2070_v12  ;;  %1639 = vmatprep.subr.bf16.mxu1 %v2071_v13  ;;  %v2080_v28 = vld [vmem:[%s2908_s2 + $0xd8] sm:$0xff]   ;;  %v2081_v29 = vld [vmem:[%s2908_s2 + $0x20] sm:$0xff]   ;;  %v310_v32 = vld [vmem:[%s2907_s1 + $0x48] sm:$0xff] }
   0xa   :  { %1701 = vmatprep.subr.bf16.mxu0 %v2072_v14  ;;  %1875 = vmatprep.mubr.msk.bf16.mxu0 %vm333_vm0, %v319_v19  ;;  %v2082_v30 = vld [vmem:[%s2908_s2 + $0x98] sm:$0xff]   ;;  %v309_v31 = vld [vmem:[%s2907_s1 + $0x40] sm:$0xff]  ;;  %v311_v33 = vld [vmem:[%s2907_s1 + $0x50] sm:$0xff] }
   0xb   :  { %v312_v34 = vld [vmem:[%s2907_s1 + $0x58] sm:$0xff]  ;;  %v321_v35 = vpack.c.bf16 %v310_v32, %v309_v31  ;;  %v2083_v37 = vld [vmem:[%s2908_s2 + $0x68] sm:$0xff]   ;;  %v2084_v38 = vld [vmem:[%s2908_s2 + $0xe0] sm:$0xff]  }
   0xc   :  { %1640 = vmatpush3.bf16.msra.mxu1 %v2073_v15  ;;  %v322_v36 = vpack.c.bf16 %v312_v34, %v311_v33  ;;  %v2085_v39 = vld [vmem:[%s2908_s2 + $0x28] sm:$0xff]   ;;  %v2086_v40 = vld [vmem:[%s2908_s2 + $0xa0] sm:$0xff]   ;;  %v2087_v41 = vld [vmem:[%s2908_s2 + $0x70] sm:$0xff]  }
   0xd   :  { %1702 = vmatpush3.bf16.msra.mxu0 %v2074_v16  ;;  %1641 = vmatprep.subr.bf16.mxu1 %v2075_v23  ;;  %v2088_v42 = vld [vmem:[%s2908_s2 + $0xe8] sm:$0xff]   ;;  %v2089_v43 = vld [vmem:[%s2908_s2 + $0x30] sm:$0xff]   ;;  %v313_v45 = vld [vmem:[%s2907_s1 + $0x60] sm:$0xff] }
   0xe   :  { %1703 = vmatprep.subr.bf16.mxu0 %v2076_v24  ;;  %v2090_v44 = vld [vmem:[%s2908_s2 + $0xa8] sm:$0xff]   ;;  %v315_v47 = vld [vmem:[%s2907_s1 + $0x70] sm:$0xff]  ;;  %v316_v49 = vld [vmem:[%s2907_s1 + $0x78] sm:$0xff] }
   0xf   :  { %v314_v46 = vld [vmem:[%s2907_s1 + $0x68] sm:$0xff]  ;;  %v324_v50 = vpack.c.bf16 %v316_v49, %v315_v47  ;;  %v2091_v51 = vld [vmem:[%s2908_s2 + $0x78] sm:$0xff]   ;;  %v2092_v52 = vld [vmem:[%s2908_s2 + $0xf0] sm:$0xff]  }
  0x10   :  { %1876 = vmatmul.mubr.msk.bf16.gmra.mrb[4].mxu0 %vm333_vm0, %v320_v22  ;;  %1642 = vmatpush3.bf16.msra.mxu1 %v2077_v25  ;;  %v323_v48 = vpack.c.bf16 %v314_v46, %v313_v45  ;;  %v2093_v53 = vld [vmem:[%s2908_s2 + $0x38] sm:$0xff]   ;;  %v2094_v54 = vld [vmem:[%s2908_s2 + $0xb0] sm:$0xff]   ;;  %v36_v55 = vld [vmem:[%s2906_s0 + $0x8] sm:$0xff] }
  0x11   :  { %1704 = vmatpush3.bf16.msra.mxu0 %v2078_v26  ;;  %1643 = vmatprep.subr.bf16.mxu1 %v2079_v27  ;;  %v43_v56 = vld [vmem:[%s2906_s0 + $0x40] sm:$0xff]  ;;  %v42_v59 = vld [vmem:[%s2906_s0 + $0x38] sm:$0xff]  ;;  %v45_v2 = vld [vmem:[%s2906_s0 + $0x50] sm:$0xff] }
  0x12   :  { %1705 = vmatprep.subr.bf16.mxu0 %v2080_v28  ;;  %1879 = vmatprep.mubr.msk.bf16.mxu0 %vm333_vm0, %v321_v35  ;;  %v148_v57 = vpack.c.bf16 %v43_v56, %v36_v55  ;;  %v35_v58 = vld [vmem:[%s2906_s0] sm:$0xff]  ;;  %v2095_v61 = vld [vmem:[%s2908_s2 + $0xf8] sm:$0xff]   ;;  %v37_v3 = vld [vmem:[%s2906_s0 + $0x10] sm:$0xff] }
  0x13   :  { %v147_v60 = vpack.c.bf16 %v42_v59, %v35_v58  ;;  %v2096_v62 = vld [vmem:[%s2908_s2 + $0x140] sm:$0xff]   ;;  %v2097_v63 = vld [vmem:[%s2908_s2 + $0xb8] sm:$0xff]   ;;  %v44_v4 = vld [vmem:[%s2906_s0 + $0x48] sm:$0xff] }
  0x14   :  { %1644 = vmatpush3.bf16.msra.mxu1 %v2081_v29  ;;  %805 = vmatprep.mubr.bf16.mxu1 %v148_v57  ;;  %v2098_v0 = vld [vmem:[%s2908_s2 + $0x100] sm:$0xff]   ;;  %v38_v1 = vld [vmem:[%s2906_s0 + $0x18] sm:$0xff]  ;;  %v149_v6 = vpack.c.bf16 %v44_v4, %v37_v3  ;;  %v57_v8 = vld [vmem:[%s2906_s0 + $0xb0] sm:$0xff] }
  0x15   :  { %1706 = vmatpush3.bf16.msra.mxu0 %v2082_v30  ;;  %1645 = vmatprep.subr.bf16.mxu1 %v2083_v37  ;;  %v150_v5 = vpack.c.bf16 %v45_v2, %v38_v1  ;;  %v50_v7 = vld [vmem:[%s2906_s0 + $0x78] sm:$0xff]  ;;  %v49_v9 = vld [vmem:[%s2906_s0 + $0x70] sm:$0xff]  ;;  %v56_v11 = vld [vmem:[%s2906_s0 + $0xa8] sm:$0xff] }
  0x16   :  { %1707 = vmatprep.subr.bf16.mxu0 %v2084_v38  ;;  %v155_v10 = vpack.c.bf16 %v57_v8, %v50_v7  ;;  %v154_v12 = vpack.c.bf16 %v56_v11, %v49_v9  ;;  %v2099_v13 = vld [vmem:[%s2908_s2 + $0x148] sm:$0xff]   ;;  %v59_v16 = vld [vmem:[%s2906_s0 + $0xc0] sm:$0xff]  ;;  %v58_v20 = vld [vmem:[%s2906_s0 + $0xb8] sm:$0xff] }
  0x17   :  { %v2100_v14 = vld [vmem:[%s2908_s2 + $0x108] sm:$0xff]   ;;  %v2101_v18 = vld [vmem:[%s2908_s2 + $0x180] sm:$0xff]   ;;  %v70_v24 = vld [vmem:[%s2906_s0 + $0x118] sm:$0xff] }
  0x18   :  { %1880 = vmatmul.mubr.msk.bf16.gmra.mrb[8].mxu0 %vm333_vm0, %v322_v36  ;;  %1646 = vmatpush3.bf16.msra.mxu1 %v2085_v39  ;;  %v52_v15 = vld [vmem:[%s2906_s0 + $0x88] sm:$0xff]  ;;  %v51_v19 = vld [vmem:[%s2906_s0 + $0x80] sm:$0xff]  ;;  %v2102_v27 = vld [vmem:[%s2908_s2 + $0x150] sm:$0xff]  }
  0x19   :  { %1708 = vmatpush3.bf16.msra.mxu0 %v2086_v40  ;;  %1647 = vmatprep.subr.bf16.mxu1 %v2087_v41  ;;  %v157_v17 = vpack.c.bf16 %v59_v16, %v52_v15  ;;  %v64_v21 = vld [vmem:[%s2906_s0 + $0xe8] sm:$0xff]  ;;  %v71_v22 = vld [vmem:[%s2906_s0 + $0x120] sm:$0xff]  ;;  %v156_v25 = vpack.c.bf16 %v58_v20, %v51_v19  ;;  %v2103_v28 = vld [vmem:[%s2908_s2 + $0x110] sm:$0xff]  }
  0x1a   :  { %1709 = vmatprep.subr.bf16.mxu0 %v2088_v42  ;;  %1883 = vmatprep.mubr.msk.bf16.mxu0 %vm333_vm0, %v323_v48  ;;  %v63_v23 = vld [vmem:[%s2906_s0 + $0xe0] sm:$0xff]  ;;  %v162_v26 = vpack.c.bf16 %v71_v22, %v64_v21  ;;  %v66_v30 = vld [vmem:[%s2906_s0 + $0xf8] sm:$0xff]  ;;  %v73_v31 = vld [vmem:[%s2906_s0 + $0x130] sm:$0xff] }
  0x1b   :  { %v161_v29 = vpack.c.bf16 %v70_v24, %v63_v23  ;;  %v164_v32 = vpack.c.bf16 %v73_v31, %v66_v30  ;;  %v78_v33 = vld [vmem:[%s2906_s0 + $0x158] sm:$0xff]  ;;  %v85_v34 = vld [vmem:[%s2906_s0 + $0x190] sm:$0xff]  ;;  %v72_v36 = vld [vmem:[%s2906_s0 + $0x128] sm:$0xff] }
  0x1c   :  { %1648 = vmatpush3.bf16.msra.mxu1 %v2089_v43  ;;  %v65_v35 = vld [vmem:[%s2906_s0 + $0xf0] sm:$0xff]  ;;  %v169_v37 = vpack.c.bf16 %v85_v34, %v78_v33  ;;  %v2104_v38 = vld [vmem:[%s2908_s2 + $0x158] sm:$0xff]   ;;  %v80_v40 = vld [vmem:[%s2906_s0 + $0x168] sm:$0xff] }
  0x1d   :  { %1710 = vmatpush3.bf16.msra.mxu0 %v2090_v44  ;;  %1649 = vmatprep.subr.bf16.mxu1 %v2091_v51  ;;  %v2105_v39 = vld [vmem:[%s2908_s2 + $0x118] sm:$0xff]   ;;  %v77_v41 = vld [vmem:[%s2906_s0 + $0x150] sm:$0xff]  ;;  %v84_v42 = vld [vmem:[%s2906_s0 + $0x188] sm:$0xff]  ;;  %v163_v44 = vpack.c.bf16 %v72_v36, %v65_v35 }
  0x1e   :  { %1711 = vmatprep.subr.bf16.mxu0 %v2092_v52  ;;  %v87_v43 = vld [vmem:[%s2906_s0 + $0x1a0] sm:$0xff]  ;;  %v92_v45 = vld [vmem:[%s2906_s0 + $0x1c8] sm:$0xff]  ;;  %v168_v48 = vpack.c.bf16 %v84_v42, %v77_v41  ;;  %v98_v55 = vld [vmem:[%s2906_s0 + $0x1f8] sm:$0xff] }
  0x1f   :  { %v99_v46 = vld [vmem:[%s2906_s0 + $0x200] sm:$0xff]  ;;  %v171_v47 = vpack.c.bf16 %v87_v43, %v80_v40  ;;  %v94_v56 = vld [vmem:[%s2906_s0 + $0x1d8] sm:$0xff]  ;;  %v101_v57 = vld [vmem:[%s2906_s0 + $0x210] sm:$0xff] }
  0x20   :  { %1884 = vmatmul.mubr.msk.bf16.gmra.mrb[12].mxu0 %vm333_vm0, %v324_v50  ;;  %1650 = vmatpush3.bf16.msra.mxu1 %v2093_v53  ;;  %v2106_v49 = vld [vmem:[%s2908_s2 + $0x160] sm:$0xff]   ;;  %v176_v50 = vpack.c.bf16 %v99_v46, %v92_v45  ;;  %v86_v53 = vld [vmem:[%s2906_s0 + $0x198] sm:$0xff]  ;;  %v2108_v58 = vld [vmem:[%s2908_s2 + $0x168] sm:$0xff]  }
  0x21   :  { %1712 = vmatpush3.bf16.msra.mxu0 %v2094_v54  ;;  %1763 = vmatprep.subr.bf16.mxu1 %v2096_v62  ;;  %v2107_v51 = vld [vmem:[%s2908_s2 + $0x120] sm:$0xff]   ;;  %v2109_v59 = vld [vmem:[%s2908_s2 + $0x128] sm:$0xff]   ;;  %v113_v62 = vld [vmem:[%s2906_s0 + $0x270] sm:$0xff] }
  0x22   :  { %1713 = vmatprep.subr.bf16.mxu0 %v2095_v61  ;;  %902 = vmatprep.mubr.bf16.mxu0 %v150_v5  ;;  %v79_v52 = vld [vmem:[%s2906_s0 + $0x160] sm:$0xff]  ;;  %v106_v61 = vld [vmem:[%s2906_s0 + $0x238] sm:$0xff]  ;;  %v2110_v2 = vld [vmem:[%s2908_s2 + $0x170] sm:$0xff]  }
  0x23   :  { %806 = vmatmul.mubr.bf16.vlgmr.msra.gmra.mrb[0].mxu1 %v147_v60  ;;  %v91_v54 = vld [vmem:[%s2906_s0 + $0x1c0] sm:$0xff]  ;;  %v170_v60 = vpack.c.bf16 %v86_v53, %v79_v52  ;;  %v183_v1 = vpack.c.bf16 %v113_v62, %v106_v61  ;;  %v93_v3 = vld [vmem:[%s2906_s0 + $0x1d0] sm:$0xff]  ;;  %v100_v5 = vld [vmem:[%s2906_s0 + $0x208] sm:$0xff] }
  0x24   :  { %1764 = vmatpush3.bf16.msra.mxu1 %v2098_v0  ;;  %813 = vmatprep.mubr.bf16.mxu1 %v155_v10  ;;  %v175_v0 = vpack.c.bf16 %v98_v55, %v91_v54  ;;  %v2111_v4 = vld [vmem:[%s2908_s2 + $0x130] sm:$0xff]   ;;  %v112_v7 = vld [vmem:[%s2906_s0 + $0x268] sm:$0xff]  ;;  %v115_v9 = vld [vmem:[%s2906_s0 + $0x280] sm:$0xff] }
  0x25   :  { %1714 = vmatpush3.bf16.msra.mxu0 %v2097_v63  ;;  %1765 = vmatprep.subr.bf16.mxu1 %v2099_v13  ;;  %v178_v63 = vpack.c.bf16 %v101_v57, %v94_v56  ;;  %v108_v8 = vld [vmem:[%s2906_s0 + $0x248] sm:$0xff]  ;;  %v127_v11 = vld [vmem:[%s2906_s0 + $0x2e0] sm:$0xff]  ;;  %v2112_v13 = vld [vmem:[%s2908_s2 + $0x178] sm:$0xff]  }
  0x26   :  { %1887 = vmatprep.subr.bf16.mxu0 %v2101_v18  ;;  %v120_v10 = vld [vmem:[%s2906_s0 + $0x2a8] sm:$0xff]  ;;  %v2113_v15 = vld [vmem:[%s2908_s2 + $0x138] sm:$0xff]   ;;  %v129_v21 = vld [vmem:[%s2906_s0 + $0x2f0] sm:$0xff] }
  0x27   :  { %v114_v19 = vld [vmem:[%s2906_s0 + $0x278] sm:$0xff]  ;;  %v119_v22 = vld [vmem:[%s2906_s0 + $0x2a0] sm:$0xff]  ;;  %v121_v30 = vld [vmem:[%s2906_s0 + $0x2b0] sm:$0xff] }
  0x28   :  { %903 = vmatmul.mubr.bf16.vlgmr.msra.gmra.mrb[16].mxu0 %v149_v6  ;;  %1766 = vmatpush3.bf16.msra.mxu1 %v2100_v14  ;;  %v105_v6 = vld [vmem:[%s2906_s0 + $0x230] sm:$0xff]  ;;  %v185_v14 = vpack.c.bf16 %v115_v9, %v108_v8  ;;  %v122_v20 = vld [vmem:[%s2906_s0 + $0x2b8] sm:$0xff]  ;;  %v128_v31 = vld [vmem:[%s2906_s0 + $0x2e8] sm:$0xff] }
  0x29   :  { %910 = vmatprep.mubr.bf16.mxu0 %v157_v17  ;;  %1888 = vmatpush3.bf16.msra.mxu0 %v2101_v18  ;;  %v182_v16 = vpack.c.bf16 %v112_v7, %v105_v6  ;;  %v190_v17 = vpack.c.bf16 %v127_v11, %v120_v10  ;;  %v107_v18 = vld [vmem:[%s2906_s0 + $0x240] sm:$0xff]  ;;  %v126_v23 = vld [vmem:[%s2906_s0 + $0x2d8] sm:$0xff]  ;;  %v133_v34 = vld [vmem:[%s2906_s0 + $0x310] sm:$0xff]  ;;  %v191_v36 = vpack.c.bf16 %v128_v31, %v121_v30 }
  0x2a   :  { %1767 = vmatprep.subr.bf16.mxu1 %v2102_v27  ;;  %v184_v24 = vpack.c.bf16 %v114_v19, %v107_v18  ;;  %v192_v27 = vpack.c.bf16 %v129_v21, %v122_v20  ;;  %v143_v33 = vld [vmem:[%s2906_s0 + $0x360] sm:$0xff]  ;;  %v140_v35 = vld [vmem:[%s2906_s0 + $0x348] sm:$0xff]  ;;  %v142_v42 = vld [vmem:[%s2906_s0 + $0x358] sm:$0xff] }
  0x2b   :  { %814 = vmatmul.mubr.bf16.gmra.mrb[4].mxu1 %v154_v12  ;;  %v177_v12 = vpack.c.bf16 %v100_v5, %v93_v3  ;;  %v196_v40 = vpack.c.bf16 %v140_v35, %v133_v34  ;;  %v135_v41 = vld [vmem:[%s2906_s0 + $0x320] sm:$0xff]  ;;  %v48_v45 = vld [vmem:[%s2906_s0 + $0x68] sm:$0xff] }
  0x2c   :  { %821 = vmatprep.mubr.bf16.mxu1 %v162_v26  ;;  %1768 = vmatpush3.bf16.msra.mxu1 %v2103_v28  ;;  %v141_v26 = vld [vmem:[%s2906_s0 + $0x350] sm:$0xff]  ;;  %v189_v28 = vpack.c.bf16 %v126_v23, %v119_v22  ;;  %v39_v46 = vld [vmem:[%s2906_s0 + $0x20] sm:$0xff] }
  0x2d   :  { %1769 = vmatprep.subr.bf16.mxu1 %v2104_v38  ;;  %v47_v38 = vld [vmem:[%s2906_s0 + $0x60] sm:$0xff] }
  0x30   :  { %911 = vmatmul.mubr.bf16.gmra.mrb[20].mxu0 %v156_v25  ;;  %1770 = vmatpush3.bf16.msra.mxu1 %v2105_v39  ;;  %v134_v25 = vld [vmem:[%s2906_s0 + $0x318] sm:$0xff] }
  0x31   :  { %918 = vmatprep.mubr.bf16.mxu0 %v164_v32  ;;  %1771 = vmatprep.subr.bf16.mxu1 %v2106_v49  ;;  %v136_v32 = vld [vmem:[%s2906_s0 + $0x328] sm:$0xff]  ;;  %v54_v49 = vld [vmem:[%s2906_s0 + $0x98] sm:$0xff] }
  0x32   :  { %v199_v39 = vpack.c.bf16 %v143_v33, %v136_v32 }
  0x33   :  { %822 = vmatmul.mubr.bf16.gmra.mrb[8].mxu1 %v161_v29  ;;  %v197_v29 = vpack.c.bf16 %v141_v26, %v134_v25 }
  0x34   :  { %829 = vmatprep.mubr.bf16.mxu1 %v169_v37  ;;  %1772 = vmatpush3.bf16.msra.mxu1 %v2107_v51  ;;  %v40_v37 = vld [vmem:[%s2906_s0 + $0x28] sm:$0xff] }
  0x35   :  { %1773 = vmatprep.subr.bf16.mxu1 %v2108_v58  ;;  %v152_v43 = vpack.c.bf16 %v47_v38, %v40_v37 }
  0x38   :  { %919 = vmatmul.mubr.bf16.gmra.mrb[24].mxu0 %v163_v44  ;;  %1774 = vmatpush3.bf16.msra.mxu1 %v2109_v59  ;;  %v41_v44 = vld [vmem:[%s2906_s0 + $0x30] sm:$0xff] }
  0x39   :  { %926 = vmatprep.mubr.bf16.mxu0 %v171_v47  ;;  %1775 = vmatprep.subr.bf16.mxu1 %v2110_v2  ;;  %v46_v47 = vld [vmem:[%s2906_s0 + $0x58] sm:$0xff] }
  0x3b   :  { %830 = vmatmul.mubr.bf16.gmra.mrb[12].mxu1 %v168_v48  ;;  %v198_v48 = vpack.c.bf16 %v142_v42, %v135_v41 }
  0x3c   :  { %837 = vmatprep.mubr.bf16.mxu1 %v176_v50  ;;  %1776 = vmatpush3.bf16.msra.mxu1 %v2111_v4  ;;  %v61_v50 = vld [vmem:[%s2906_s0 + $0xd0] sm:$0xff] }
  0x3d   :  { %1777 = vmatprep.subr.bf16.mxu1 %v2112_v13 }
  0x40   :  { %927 = vmatmul.mubr.bf16.gmra.mrb[28].mxu0 %v170_v60  ;;  %1778 = vmatpush3.bf16.msra.mxu1 %v2113_v15 }
  0x41   :  { %934 = vmatprep.mubr.bf16.mxu0 %v178_v63 }
  0x43   :  { %838 = vmatmul.mubr.bf16.gmra.mrb[16].mxu1 %v175_v0 }
  0x44   :  { %845 = vmatprep.mubr.bf16.mxu1 %v183_v1 }
  0x48   :  { %935 = vmatmul.mubr.bf16.gmra.mrb[32].mxu0 %v177_v12 }
  0x49   :  { %942 = vmatprep.mubr.bf16.mxu0 %v185_v14 }
  0x4b   :  { %846 = vmatmul.mubr.bf16.gmra.mrb[20].mxu1 %v182_v16 }
  0x4c   :  { %853 = vmatprep.mubr.bf16.mxu1 %v190_v17 }
  0x50   :  { %943 = vmatmul.mubr.bf16.gmra.mrb[36].mxu0 %v184_v24 }
  0x51   :  { %950 = vmatprep.mubr.bf16.mxu0 %v192_v27 }
  0x53   :  { %854 = vmatmul.mubr.bf16.gmra.mrb[24].mxu1 %v189_v28 }
  0x54   :  { %861 = vmatprep.mubr.bf16.mxu1 %v197_v29 }
  0x58   :  { %951 = vmatmul.mubr.bf16.gmra.mrb[40].mxu0 %v191_v36 }
  0x59   :  { %958 = vmatprep.mubr.bf16.mxu0 %v199_v39 }
  0x5b   :  { %862 = vmatmul.mubr.bf16.gmra.mrb[28].mxu1 %v196_v40 }
  0x5c   :  { %999 = vmatprep.mubr.bf16.mxu1 %v152_v43 }
  0x5d   :  { %15 = vsyncpa [#allocation4], 0  ;;  %v153_v51 = vpack.c.bf16 %v48_v45, %v41_v44  ;;  %v151_v52 = vpack.c.bf16 %v46_v47, %v39_v46  ;;  %v159_v53 = vpack.c.bf16 %v61_v50, %v54_v49  ;;  %v55_v54 = vld [vmem:[%s2906_s0 + $0xa0] sm:$0xff]  ;;  %v62_v55 = vld [vmem:[%s2906_s0 + $0xd8] sm:$0xff]  ;;  %s2153_s14 = smov [#allocation3]  }
  0x5e   :  { %v69_v56 = vld [vmem:[%s2906_s0 + $0x110] sm:$0xff]  ;;  %v76_v57 = vld [vmem:[%s2906_s0 + $0x148] sm:$0xff]  ;;  %v160_v60 = vpack.c.bf16 %v62_v55, %v55_v54  ;;  %v75_v62 = vld [vmem:[%s2906_s0 + $0x140] sm:$0xff]  ;;  %s1542_s15 = sshll.u32 %s2153_s14, 4  ;;  %s1543_s15 = int_to_ptr.vmem [resolvable:$true] %s1542_s15 }
  0x5f   :  { %v53_v58 = vld [vmem:[%s2906_s0 + $0x90] sm:$0xff]  ;;  %v60_v59 = vld [vmem:[%s2906_s0 + $0xc8] sm:$0xff]  ;;  %v167_v63 = vpack.c.bf16 %v76_v57, %v69_v56  ;;  %v83_v2 = vld [vmem:[%s2906_s0 + $0x180] sm:$0xff]  ;;  %s2130_s2 = scalar_lea.vmem %s1543_s15, 32  ;;  %p2131_p1 = scmp.lt.s32.totalorder %s1543_s15, %s1543_s15 }
  0x60   :  { %959 = vmatmul.mubr.bf16.gmra.mrb[44].mxu0 %v198_v48  ;;  %v68_v61 = vld [vmem:[%s2906_s0 + $0x108] sm:$0xff]  ;;  %v158_v0 = vpack.c.bf16 %v60_v59, %v53_v58  ;;  %v90_v3 = vld [vmem:[%s2906_s0 + $0x1b8] sm:$0xff]  ;;  %v97_v4 = vld [vmem:[%s2906_s0 + $0x1f0] sm:$0xff] }
  0x61   :  { %1889 = vmatprep.mubr.msk.bf16.mxu0 %vm333_vm0, %v153_v51  ;;  %v166_v1 = vpack.c.bf16 %v75_v62, %v68_v61  ;;  %v104_v5 = vld [vmem:[%s2906_s0 + $0x228] sm:$0xff]  ;;  %v67_v6 = vld [vmem:[%s2906_s0 + $0x100] sm:$0xff]  ;;  %v74_v7 = vld [vmem:[%s2906_s0 + $0x138] sm:$0xff]  ;;  %v174_v8 = vpack.c.bf16 %v90_v3, %v83_v2 }
  0x62   :  { %v82_v9 = vld [vmem:[%s2906_s0 + $0x178] sm:$0xff]  ;;  %v89_v10 = vld [vmem:[%s2906_s0 + $0x1b0] sm:$0xff]  ;;  %v181_v11 = vpack.c.bf16 %v104_v5, %v97_v4  ;;  %v165_v12 = vpack.c.bf16 %v74_v7, %v67_v6  ;;  %v111_v14 = vld [vmem:[%s2906_s0 + $0x260] sm:$0xff] }
  0x63   :  { %1000 = vmatmul.mubr.bf16.vlgmr.msra.gmra.mrb[32].mxu1 %v151_v52  ;;  %v173_v13 = vpack.c.bf16 %v89_v10, %v82_v9  ;;  %v118_v15 = vld [vmem:[%s2906_s0 + $0x298] sm:$0xff]  ;;  %v125_v16 = vld [vmem:[%s2906_s0 + $0x2d0] sm:$0xff]  ;;  %v132_v17 = vld [vmem:[%s2906_s0 + $0x308] sm:$0xff] }
  0x64   :  { %1007 = vmatprep.mubr.bf16.mxu1 %v159_v53  ;;  %v81_v18 = vld [vmem:[%s2906_s0 + $0x170] sm:$0xff]  ;;  %v88_v19 = vld [vmem:[%s2906_s0 + $0x1a8] sm:$0xff]  ;;  %v188_v20 = vpack.c.bf16 %v118_v15, %v111_v14  ;;  %v103_v22 = vld [vmem:[%s2906_s0 + $0x220] sm:$0xff]  ;;  %v195_v23 = vpack.c.bf16 %v132_v17, %v125_v16 }
  0x65   :  { %v96_v21 = vld [vmem:[%s2906_s0 + $0x1e8] sm:$0xff]  ;;  %v172_v24 = vpack.c.bf16 %v88_v19, %v81_v18  ;;  %v139_v26 = vld [vmem:[%s2906_s0 + $0x340] sm:$0xff]  ;;  %v146_v27 = vld [vmem:[%s2906_s0 + $0x378] sm:$0xff] }
  0x66   :  { %v180_v25 = vpack.c.bf16 %v103_v22, %v96_v21  ;;  %v95_v28 = vld [vmem:[%s2906_s0 + $0x1e0] sm:$0xff]  ;;  %v102_v29 = vld [vmem:[%s2906_s0 + $0x218] sm:$0xff]  ;;  %v202_v30 = vpack.c.bf16 %v146_v27, %v139_v26  ;;  %v117_v32 = vld [vmem:[%s2906_s0 + $0x290] sm:$0xff] }
  0x67   :  { %v110_v31 = vld [vmem:[%s2906_s0 + $0x258] sm:$0xff]  ;;  %v179_v33 = vpack.c.bf16 %v102_v29, %v95_v28  ;;  %v109_v35 = vld [vmem:[%s2906_s0 + $0x250] sm:$0xff]  ;;  %v116_v36 = vld [vmem:[%s2906_s0 + $0x288] sm:$0xff] }
  0x68   :  { %1890 = vmatmul.mubr.msk.bf16.vlgmr.msra.gmra.mrb[0].mxu0 %vm333_vm0, %v160_v60  ;;  %v187_v34 = vpack.c.bf16 %v117_v32, %v110_v31  ;;  %v124_v37 = vld [vmem:[%s2906_s0 + $0x2c8] sm:$0xff]  ;;  %v131_v38 = vld [vmem:[%s2906_s0 + $0x300] sm:$0xff]  ;;  %v186_v39 = vpack.c.bf16 %v116_v36, %v109_v35  ;;  %v130_v42 = vld [vmem:[%s2906_s0 + $0x2f8] sm:$0xff] }
  0x69   :  { %1893 = vmatprep.mubr.msk.bf16.mxu0 %vm333_vm0, %v167_v63  ;;  %v194_v40 = vpack.c.bf16 %v131_v38, %v124_v37  ;;  %v123_v41 = vld [vmem:[%s2906_s0 + $0x2c0] sm:$0xff]  ;;  %v138_v43 = vld [vmem:[%s2906_s0 + $0x338] sm:$0xff]  ;;  %v145_v44 = vld [vmem:[%s2906_s0 + $0x370] sm:$0xff] }
  0x6a   :  { %v193_v45 = vpack.c.bf16 %v130_v42, %v123_v41  ;;  %v201_v46 = vpack.c.bf16 %v145_v44, %v138_v43  ;;  %v137_v47 = vld [vmem:[%s2906_s0 + $0x330] sm:$0xff]  ;;  %v144_v48 = vld [vmem:[%s2906_s0 + $0x368] sm:$0xff]  ;;  %v2114_v50 = vld [vmem:[%s2911_s5] sm:$0xff]  }
  0x6b   :  { %1008 = vmatmul.mubr.bf16.gmra.mrb[36].mxu1 %v158_v0  ;;  %v200_v49 = vpack.c.bf16 %v144_v48, %v137_v47  ;;  %1905 = vmatprep.subr.bf16.mxu0 %v2114_v50  ;;  %v2115_v51 = vld [vmem:[%s2911_s5 + $0x8] sm:$0xff]   ;;  %v2116_v52 = vld [vmem:[%s2911_s5 + $0x10] sm:$0xff]   ;;  %v2117_v53 = vld [vmem:[%s2911_s5 + $0x18] sm:$0xff]  }
  0x6c   :  { %1015 = vmatprep.mubr.bf16.mxu1 %v166_v1  ;;  %1906 = vmatpush3.bf16.msra.mxu0 %v2114_v50  ;;  %v2118_v54 = vld [vmem:[%s2911_s5 + $0x20] sm:$0xff]   ;;  %v2119_v55 = vld [vmem:[%s2911_s5 + $0x28] sm:$0xff]   ;;  %v2120_v56 = vld [vmem:[%s2911_s5 + $0x30] sm:$0xff]  }
  0x6d   :  { %1907 = vmatprep.subr.bf16.mxu0 %v2115_v51  ;;  %v2121_v57 = vld [vmem:[%s2911_s5 + $0x38] sm:$0xff]  }
  0x70   :  { %1894 = vmatmul.mubr.msk.bf16.gmra.mrb[4].mxu0 %vm333_vm0, %v174_v8 }
  0x71   :  { %1897 = vmatprep.mubr.msk.bf16.mxu0 %vm333_vm0, %v181_v11  ;;  %1908 = vmatpush3.bf16.msra.mxu0 %v2115_v51 }
  0x72   :  { %1909 = vmatprep.subr.bf16.mxu0 %v2116_v52 }
  0x73   :  { %1016 = vmatmul.mubr.bf16.gmra.mrb[40].mxu1 %v165_v12 }
  0x74   :  { %1023 = vmatprep.mubr.bf16.mxu1 %v173_v13 }
  0x75   :  { %1910 = vmatpush3.bf16.msra.mxu0 %v2116_v52 }
  0x76   :  { %1911 = vmatprep.subr.bf16.mxu0 %v2117_v53 }
  0x78   :  { %1898 = vmatmul.mubr.msk.bf16.gmra.mrb[8].mxu0 %vm333_vm0, %v188_v20 }
  0x79   :  { %1901 = vmatprep.mubr.msk.bf16.mxu0 %vm333_vm0, %v195_v23  ;;  %1912 = vmatpush3.bf16.msra.mxu0 %v2117_v53 }
  0x7a   :  { %1913 = vmatprep.subr.bf16.mxu0 %v2118_v54 }
  0x7b   :  { %1024 = vmatmul.mubr.bf16.gmra.mrb[44].mxu1 %v172_v24 }
  0x7c   :  { %1031 = vmatprep.mubr.bf16.mxu1 %v180_v25 }
  0x7d   :  { %1914 = vmatpush3.bf16.msra.mxu0 %v2118_v54 }
  0x7e   :  { %1915 = vmatprep.subr.bf16.mxu0 %v2119_v55 }
  0x80   :  { %1902 = vmatmul.mubr.msk.bf16.gmra.mrb[12].mxu0 %vm333_vm0, %v202_v30 }
  0x81   :  { %1916 = vmatpush3.bf16.msra.mxu0 %v2119_v55 }
  0x82   :  { %1917 = vmatprep.subr.bf16.mxu0 %v2120_v56 }
  0x83   :  { %1032 = vmatmul.mubr.bf16.gmra.mrb[48].mxu1 %v179_v33 }
  0x84   :  { %1039 = vmatprep.mubr.bf16.mxu1 %v187_v34 }
  0x85   :  { %1918 = vmatpush3.bf16.msra.mxu0 %v2120_v56 }
  0x86   :  { %1919 = vmatprep.subr.bf16.mxu0 %v2121_v57 }
  0x89   :  { %1920 = vmatpush3.bf16.msra.mxu0 %v2121_v57 }
  0x8b   :  { %1040 = vmatmul.mubr.bf16.gmra.mrb[52].mxu1 %v186_v39 }
  0x8c   :  { %1047 = vmatprep.mubr.bf16.mxu1 %v194_v40 }
  0x93   :  { %1048 = vmatmul.mubr.bf16.gmra.mrb[56].mxu1 %v193_v45 }
  0x94   :  { %1055 = vmatprep.mubr.bf16.mxu1 %v201_v46 }
  0x9b   :  { %1056 = vmatmul.mubr.bf16.gmra.mrb[60].mxu1 %v200_v49 }
  0xf6   :  { %v1651_v58 = vpop.f32.mrb[0].mxu1 }
  0xf7   :  { %v1652_v59 = vpop.f32.mrb[1].mxu1 }
  0xf8   :  { %v1653_v60 = vadd.f32 %v1652_v59, %v1651_v58  ;;  %v1654_v61 = vpop.f32.mrb[2].mxu1 }
  0xf9   :  { %v1655_v62 = vpop.f32.mrb[3].mxu1 }
  0xfa   :  { %v1656_v63 = vadd.f32 %v1655_v62, %v1654_v61 }
  0xfb   :  { %v1715_v0 = vpop.f32.mrb[16].mxu0 }
  0xfc   :  { %v1716_v1 = vpop.f32.mrb[17].mxu0 }
  0xfd   :  { %v1717_v2 = vadd.f32 %v1716_v1, %v1715_v0  ;;  %v1718_v3 = vpop.f32.mrb[18].mxu0 }
  0xfe   :  { %v1657_v4 = vpop.f32.mrb[4].mxu1  ;;  %v1719_v5 = vpop.f32.mrb[19].mxu0 }
  0xff   :  { %v1658_v6 = vpop.f32.mrb[5].mxu1  ;;  %v2778_v7 = vadd.f32 %v1717_v2, %v1653_v60  ;;  %v1720_v8 = vadd.f32 %v1719_v5, %v1718_v3 }
 0x100   :  { %v1659_v9 = vadd.f32 %v1658_v6, %v1657_v4  ;;  %v1660_v10 = vpop.f32.mrb[6].mxu1 }
 0x101   :  { %v1661_v11 = vpop.f32.mrb[7].mxu1  ;;  %v2780_v12 = vadd.f32 %v1720_v8, %v1656_v63 }
 0x102   :  { %v1662_v13 = vadd.f32 %v1661_v11, %v1660_v10 }
 0x103   :  { %v1721_v14 = vpop.f32.mrb[20].mxu0 }
 0x104   :  { %v1722_v15 = vpop.f32.mrb[21].mxu0 }
 0x105   :  { %v1723_v16 = vadd.f32 %v1722_v15, %v1721_v14  ;;  %v1724_v17 = vpop.f32.mrb[22].mxu0 }
 0x106   :  { %v1663_v18 = vpop.f32.mrb[8].mxu1  ;;  %v1725_v19 = vpop.f32.mrb[23].mxu0 }
 0x107   :  { %v1664_v20 = vpop.f32.mrb[9].mxu1  ;;  %v2782_v21 = vadd.f32 %v1723_v16, %v1659_v9  ;;  %v1726_v22 = vadd.f32 %v1725_v19, %v1724_v17 }
 0x108   :  { %v1665_v23 = vadd.f32 %v1664_v20, %v1663_v18  ;;  %v1666_v24 = vpop.f32.mrb[10].mxu1 }
 0x109   :  { %v1667_v25 = vpop.f32.mrb[11].mxu1  ;;  %v2784_v26 = vadd.f32 %v1726_v22, %v1662_v13 }
 0x10a   :  { %v1668_v27 = vadd.f32 %v1667_v25, %v1666_v24 }
 0x10b   :  { %v1727_v28 = vpop.f32.mrb[24].mxu0 }
 0x10c   :  { %v1728_v29 = vpop.f32.mrb[25].mxu0 }
 0x10d   :  { %v1729_v30 = vadd.f32 %v1728_v29, %v1727_v28  ;;  %v1730_v31 = vpop.f32.mrb[26].mxu0 }
 0x10e   :  { %v1669_v32 = vpop.f32.mrb[12].mxu1  ;;  %v1731_v33 = vpop.f32.mrb[27].mxu0 }
 0x10f   :  { %v1670_v34 = vpop.f32.mrb[13].mxu1  ;;  %v2786_v35 = vadd.f32 %v1729_v30, %v1665_v23  ;;  %v1732_v36 = vadd.f32 %v1731_v33, %v1730_v31 }
 0x110   :  { %v1671_v37 = vadd.f32 %v1670_v34, %v1669_v32  ;;  %v1672_v38 = vpop.f32.mrb[14].mxu1 }
 0x111   :  { %v1673_v39 = vpop.f32.mrb[15].mxu1  ;;  %v2788_v40 = vadd.f32 %v1732_v36, %v1668_v27 }
 0x112   :  { %v1674_v41 = vadd.f32 %v1673_v39, %v1672_v38 }
 0x113   :  { %v1733_v42 = vpop.f32.mrb[28].mxu0 }
 0x114   :  { %v1734_v43 = vpop.f32.mrb[29].mxu0 }
 0x115   :  { %v1735_v44 = vadd.f32 %v1734_v43, %v1733_v42  ;;  %v1736_v45 = vpop.f32.mrb[30].mxu0 }
 0x116   :  { %v1675_v46 = vpop.f32.mrb[16].mxu1  ;;  %v1737_v47 = vpop.f32.mrb[31].mxu0 }
 0x117   :  { %v1676_v48 = vpop.f32.mrb[17].mxu1  ;;  %v2790_v49 = vadd.f32 %v1735_v44, %v1671_v37  ;;  %v1738_v50 = vadd.f32 %v1737_v47, %v1736_v45 }
 0x118   :  { %v1677_v51 = vadd.f32 %v1676_v48, %v1675_v46  ;;  %v1678_v52 = vpop.f32.mrb[18].mxu1 }
 0x119   :  { %v1679_v53 = vpop.f32.mrb[19].mxu1  ;;  %v2792_v54 = vadd.f32 %v1738_v50, %v1674_v41 }
 0x11a   :  { %v1680_v55 = vadd.f32 %v1679_v53, %v1678_v52 }
 0x11b   :  { %v1739_v56 = vpop.f32.mrb[32].mxu0 }
 0x11c   :  { %v1740_v57 = vpop.f32.mrb[33].mxu0 }
 0x11d   :  { %v1741_v58 = vadd.f32 %v1740_v57, %v1739_v56  ;;  %v1742_v59 = vpop.f32.mrb[34].mxu0 }
 0x11e   :  { %v1681_v60 = vpop.f32.mrb[20].mxu1  ;;  %v1743_v61 = vpop.f32.mrb[35].mxu0 }
 0x11f   :  { %v1682_v62 = vpop.f32.mrb[21].mxu1  ;;  %v2794_v63 = vadd.f32 %v1741_v58, %v1677_v51  ;;  %v1744_v0 = vadd.f32 %v1743_v61, %v1742_v59 }
 0x120   :  { %v1683_v1 = vadd.f32 %v1682_v62, %v1681_v60  ;;  %v1684_v2 = vpop.f32.mrb[22].mxu1  ;;  %v2815_v60 = vld [vmem:[%s2910_s4] ss:$0 sm:$0xff] }
 0x121   :  { %v1685_v3 = vpop.f32.mrb[23].mxu1  ;;  %v2796_v4 = vadd.f32 %v1744_v0, %v1680_v55 }
 0x122   :  { %v1686_v5 = vadd.f32 %v1685_v3, %v1684_v2 }
 0x123   :  { %v1745_v6 = vpop.f32.mrb[36].mxu0 }
 0x124   :  { %v1746_v8 = vpop.f32.mrb[37].mxu0 }
 0x125   :  { %v1747_v9 = vadd.f32 %v1746_v8, %v1745_v6  ;;  %v1748_v10 = vpop.f32.mrb[38].mxu0 }
 0x126   :  { %v1687_v11 = vpop.f32.mrb[24].mxu1  ;;  %v1749_v13 = vpop.f32.mrb[39].mxu0 }
 0x127   :  { %v1688_v14 = vpop.f32.mrb[25].mxu1  ;;  %v2798_v15 = vadd.f32 %v1747_v9, %v1683_v1  ;;  %v1750_v16 = vadd.f32 %v1749_v13, %v1748_v10 }
 0x128   :  { %v1689_v17 = vadd.f32 %v1688_v14, %v1687_v11  ;;  %v1690_v18 = vpop.f32.mrb[26].mxu1 }
 0x129   :  { %v1691_v19 = vpop.f32.mrb[27].mxu1  ;;  %v2800_v20 = vadd.f32 %v1750_v16, %v1686_v5 }
 0x12a   :  { %v1692_v22 = vadd.f32 %v1691_v19, %v1690_v18 }
 0x12b   :  { %v1751_v23 = vpop.f32.mrb[40].mxu0 }
 0x12c   :  { %v1752_v24 = vpop.f32.mrb[41].mxu0 }
 0x12d   :  { %v1753_v25 = vadd.f32 %v1752_v24, %v1751_v23  ;;  %v1754_v27 = vpop.f32.mrb[42].mxu0 }
 0x12e   :  { %v1693_v28 = vpop.f32.mrb[28].mxu1  ;;  %v1755_v29 = vpop.f32.mrb[43].mxu0 }
 0x12f   :  { %v1694_v30 = vpop.f32.mrb[29].mxu1  ;;  %v2802_v31 = vadd.f32 %v1753_v25, %v1689_v17  ;;  %v1756_v32 = vadd.f32 %v1755_v29, %v1754_v27 }
 0x130   :  { %v1695_v33 = vadd.f32 %v1694_v30, %v1693_v28  ;;  %v1696_v34 = vpop.f32.mrb[30].mxu1 }
 0x131   :  { %v1697_v36 = vpop.f32.mrb[31].mxu1  ;;  %v2804_v37 = vadd.f32 %v1756_v32, %v1692_v22 }
 0x132   :  { %v1698_v38 = vadd.f32 %v1697_v36, %v1696_v34 }
 0x133   :  { %v1757_v39 = vpop.f32.mrb[44].mxu0 }
 0x134   :  { %v1758_v41 = vpop.f32.mrb[45].mxu0 }
 0x135   :  { %v1759_v42 = vadd.f32 %v1758_v41, %v1757_v39  ;;  %v1760_v43 = vpop.f32.mrb[46].mxu0 }
 0x136   :  { %v1779_v44 = vpop.f32.mrb[32].mxu1  ;;  %v1761_v45 = vpop.f32.mrb[47].mxu0 }
 0x137   :  { %v1780_v46 = vpop.f32.mrb[33].mxu1  ;;  %v2806_v47 = vadd.f32 %v1759_v42, %v1695_v33  ;;  %v1762_v48 = vadd.f32 %v1761_v45, %v1760_v43 }
 0x138   :  { %v1781_v50 = vadd.f32 %v1780_v46, %v1779_v44  ;;  %v1782_v51 = vpop.f32.mrb[34].mxu1 }
 0x139   :  { %v1783_v52 = vpop.f32.mrb[35].mxu1  ;;  %v2808_v53 = vadd.f32 %v1762_v48, %v1698_v38 }
 0x13a   :  { %v1784_v55 = vadd.f32 %v1783_v52, %v1782_v51  ;;  %v2000_v56 = vadd.f32 %v2778_v7, %v1781_v50 }
 0x13b   :  { %v1891_v57 = vpop.f32.mrb[0].mxu0 }
 0x13c   :  { %v2006_v58 = vadd.f32 %v2780_v12, %v1784_v55  ;;  %v1098_v59 = vpop.f32.mrb[1].mxu0 }
 0x13d   :  { %v2001_v61 = vadd.f32 %v2000_v56, %v1098_v59  ;;  %v1892_v62 = vpop.f32.mrb[2].mxu0 }
 0x13e   :  { %v1785_v0 = vpop.f32.mrb[36].mxu1  ;;  %v1101_v1 = vpop.f32.mrb[3].mxu0 }
 0x13f   :  { %v1786_v2 = vpop.f32.mrb[37].mxu1  ;;  %v1168_v3 = vadd.f32 %v2001_v61, %v2815_v60  ;;  %v2007_v5 = vadd.f32 %v2006_v58, %v1101_v1 }
 0x140   :  { %v1787_v6 = vadd.f32 %v1786_v2, %v1785_v0  ;;  %v1788_v8 = vpop.f32.mrb[38].mxu1 }
 0x141   :  { %v1789_v7 = vpop.f32.mrb[39].mxu1  ;;  %v1200_v9 = vmul.f32 0.2, %v1168_v3  ;;  %v1169_v12 = vadd.f32 %v2007_v5, %v2815_v60  ;;  %vm1184_vm1 = vcmp.gt.f32.partialorder %v1168_v3, 0.0 }
 0x142   :  { %v1997_v10 = vadd.f32 %v2782_v21, %v1787_v6  ;;  %v1790_v11 = vadd.f32 %v1789_v7, %v1788_v8 }
 0x143   :  { %vm1185_vm2 = vcmp.gt.f32.partialorder %v1169_v12, 0.0  ;;  %v1201_v13 = vmul.f32 0.2, %v1169_v12  ;;  %v1895_v16 = vpop.f32.mrb[4].mxu0  ;;  %v1216_v24 = vsel %vm1184_vm1, %v1168_v3, %v1200_v9  ;;  %vm2151_vm1 = vmmov 0  }
 0x144   :  { %v1998_v14 = vadd.f32 %v1997_v10, %v1891_v57  ;;  %v2003_v17 = vadd.f32 %v2784_v26, %v1790_v11  ;;  %v1114_v18 = vpop.f32.mrb[5].mxu0 }
 0x145   :  { %v1896_v22 = vpop.f32.mrb[6].mxu0  ;;  %v1217_v25 = vsel %vm1185_vm2, %v1169_v12, %v1201_v13 }
 0x146   :  { %v1170_v19 = vadd.f32 %v1998_v14, %v2815_v60  ;;  %v1791_v23 = vpop.f32.mrb[40].mxu1  ;;  %v2004_v27 = vadd.f32 %v2003_v17, %v1892_v62  ;;  %v1117_v28 = vpop.f32.mrb[7].mxu0  ;;  %v1232_v30 = vpack.c.bf16 %v1217_v25, %v1216_v24 }
 0x147   :  { %v1792_v29 = vpop.f32.mrb[41].mxu1 }
 0x148   :  { %v1793_v21 = vadd.f32 %v1792_v29, %v1791_v23  ;;  %v1794_v32 = vpop.f32.mrb[42].mxu1  ;;  %v1202_v33 = vmul.f32 0.2, %v1170_v19  ;;  %v1171_v34 = vadd.f32 %v2004_v27, %v2815_v60  ;;  %1921 = vmatprep.mubr.bf16.mxu0 %v1232_v30  ;;  %vm1186_vm3 = vcmp.gt.f32.partialorder %v1170_v19, 0.0 }
 0x149   :  { %v1795_v36 = vpop.f32.mrb[43].mxu1 }
 0x14a   :  { %v2012_v26 = vadd.f32 %v2786_v35, %v1793_v21  ;;  %v1796_v38 = vadd.f32 %v1795_v36, %v1794_v32  ;;  %vm1187_vm4 = vcmp.gt.f32.partialorder %v1171_v34, 0.0  ;;  %v1203_v39 = vmul.f32 0.2, %v1171_v34 }
 0x14b   :  { %v2825_v43 = vpop.f32.mrb[8].mxu0  ;;  %v1218_v44 = vsel %vm1186_vm3, %v1170_v19, %v1202_v33 }
 0x14c   :  { %v2013_v41 = vadd.f32 %v2012_v26, %v1114_v18  ;;  %v2018_v42 = vadd.f32 %v2788_v40, %v1796_v38  ;;  %v1219_v45 = vsel %vm1187_vm4, %v1171_v34, %v1203_v39  ;;  %v1130_v46 = vpop.f32.mrb[9].mxu0 }
 0x14d   :  { %v2828_v51 = vpop.f32.mrb[10].mxu0  ;;  %v1233_v55 = vpack.c.bf16 %v1219_v45, %v1218_v44 }
 0x14e   :  { %v1172_v48 = vadd.f32 %v2013_v41, %v2815_v60  ;;  %v2019_v50 = vadd.f32 %v2018_v42, %v1117_v28  ;;  %v1797_v52 = vpop.f32.mrb[44].mxu1  ;;  %v1133_v56 = vpop.f32.mrb[11].mxu0 }
 0x14f   :  { %v1798_v35 = vpop.f32.mrb[45].mxu1  ;;  %1922 = vmatmul.mubr.bf16.vlgmr.msra.gmra.mrb[48].mxu0 %v1233_v55 }
 0x150   :  { %v1173_v57 = vadd.f32 %v2019_v50, %v2815_v60  ;;  %v1799_v58 = vadd.f32 %v1798_v35, %v1797_v52  ;;  %v1800_v59 = vpop.f32.mrb[46].mxu1  ;;  %v1204_v40 = vmul.f32 0.2, %v1172_v48  ;;  %vm1188_vm5 = vcmp.gt.f32.partialorder %v1172_v48, 0.0 }
 0x151   :  { %v1801_v61 = vpop.f32.mrb[47].mxu1 }
 0x152   :  { %v2009_v62 = vadd.f32 %v2790_v49, %v1799_v58  ;;  %v1802_v0 = vadd.f32 %v1801_v61, %v1800_v59  ;;  %vm1189_vm6 = vcmp.gt.f32.partialorder %v1173_v57, 0.0  ;;  %v1205_v1 = vmul.f32 0.2, %v1173_v57 }
 0x153   :  { %v2833_v5 = vpop.f32.mrb[12].mxu0  ;;  %v1220_v6 = vsel %vm1188_vm5, %v1172_v48, %v1204_v40 }
 0x154   :  { %v2010_v2 = vadd.f32 %v2009_v62, %v1895_v16  ;;  %v2015_v3 = vadd.f32 %v2792_v54, %v1802_v0  ;;  %v1221_v8 = vsel %vm1189_vm6, %v1173_v57, %v1205_v1  ;;  %v1146_v7 = vpop.f32.mrb[13].mxu0 }
 0x155   :  { %v1234_v9 = vpack.c.bf16 %v1221_v8, %v1220_v6  ;;  %v2836_v11 = vpop.f32.mrb[14].mxu0 }
 0x156   :  { %v1174_v12 = vadd.f32 %v2010_v2, %v2815_v60  ;;  %v2016_v10 = vadd.f32 %v2015_v3, %v1896_v22  ;;  %v1803_v13 = vpop.f32.mrb[48].mxu1  ;;  %v1149_v14 = vpop.f32.mrb[15].mxu0 }
 0x157   :  { %v1804_v49 = vpop.f32.mrb[49].mxu1  ;;  %1925 = vmatprep.mubr.bf16.mxu0 %v1234_v9 }
 0x158   :  { %v1175_v17 = vadd.f32 %v2016_v10, %v2815_v60  ;;  %v1805_v16 = vadd.f32 %v1804_v49, %v1803_v13  ;;  %v1806_v18 = vpop.f32.mrb[50].mxu1  ;;  %v1206_v54 = vmul.f32 0.2, %v1174_v12  ;;  %vm1190_vm7 = vcmp.gt.f32.partialorder %v1174_v12, 0.0 }
 0x159   :  { %v1807_v19 = vpop.f32.mrb[51].mxu1 }
 0x15a   :  { %v2024_v23 = vadd.f32 %v2794_v63, %v1805_v16  ;;  %v1808_v24 = vadd.f32 %v1807_v19, %v1806_v18  ;;  %vm1191_vm8 = vcmp.gt.f32.partialorder %v1175_v17, 0.0  ;;  %v1207_v25 = vmul.f32 0.2, %v1175_v17 }
 0x15b   :  { %v1222_v28 = vsel %vm1190_vm7, %v1174_v12, %v1206_v54 }
 0x15c   :  { %v2025_v27 = vadd.f32 %v2024_v23, %v1130_v46  ;;  %v2030_v22 = vadd.f32 %v2796_v4, %v1808_v24  ;;  %v1223_v29 = vsel %vm1191_vm8, %v1175_v17, %v1207_v25 }
 0x15d   :  { %v1235_v30 = vpack.c.bf16 %v1223_v29, %v1222_v28 }
 0x15e   :  { %v1176_v21 = vadd.f32 %v2025_v27, %v2815_v60  ;;  %v2031_v32 = vadd.f32 %v2030_v22, %v1133_v56  ;;  %v1809_v33 = vpop.f32.mrb[52].mxu1 }
 0x15f   :  { %v1810_v34 = vpop.f32.mrb[53].mxu1  ;;  %1926 = vmatmul.mubr.bf16.gmra.mrb[52].mxu0 %v1235_v30 }
 0x160   :  { %v1177_v36 = vadd.f32 %v2031_v32, %v2815_v60  ;;  %v1811_v26 = vadd.f32 %v1810_v34, %v1809_v33  ;;  %v1812_v38 = vpop.f32.mrb[54].mxu1  ;;  %v1208_v63 = vmul.f32 0.2, %v1176_v21  ;;  %vm1192_vm9 = vcmp.gt.f32.partialorder %v1176_v21, 0.0 }
 0x161   :  { %v1813_v39 = vpop.f32.mrb[55].mxu1 }
 0x162   :  { %v2021_v41 = vadd.f32 %v2798_v15, %v1811_v26  ;;  %v1814_v42 = vadd.f32 %v1813_v39, %v1812_v38  ;;  %vm1193_vm10 = vcmp.gt.f32.partialorder %v1177_v36, 0.0  ;;  %v1209_v4 = vmul.f32 0.2, %v1177_v36 }
 0x163   :  { %v1224_v46 = vsel %vm1192_vm9, %v1176_v21, %v1208_v63 }
 0x164   :  { %v2022_v44 = vadd.f32 %v2021_v41, %v2825_v43  ;;  %v2027_v45 = vadd.f32 %v2800_v20, %v1814_v42  ;;  %v1225_v48 = vsel %vm1193_vm10, %v1177_v36, %v1209_v4 }
 0x165   :  { %v1236_v50 = vpack.c.bf16 %v1225_v48, %v1224_v46 }
 0x166   :  { %v1178_v52 = vadd.f32 %v2022_v44, %v2815_v60  ;;  %v2028_v55 = vadd.f32 %v2027_v45, %v2828_v51  ;;  %v1815_v56 = vpop.f32.mrb[56].mxu1 }
 0x167   :  { %v1816_v35 = vpop.f32.mrb[57].mxu1  ;;  %1929 = vmatprep.mubr.bf16.mxu0 %v1236_v50 }
 0x168   :  { %v1179_v57 = vadd.f32 %v2028_v55, %v2815_v60  ;;  %v1817_v15 = vadd.f32 %v1816_v35, %v1815_v56  ;;  %v1818_v58 = vpop.f32.mrb[58].mxu1  ;;  %v1210_v59 = vmul.f32 0.2, %v1178_v52  ;;  %vm1194_vm11 = vcmp.gt.f32.partialorder %v1178_v52, 0.0 }
 0x169   :  { %v1819_v40 = vpop.f32.mrb[59].mxu1 }
 0x16a   :  { %v2036_v43 = vadd.f32 %v2802_v31, %v1817_v15  ;;  %v1820_v20 = vadd.f32 %v1819_v40, %v1818_v58  ;;  %vm1195_vm12 = vcmp.gt.f32.partialorder %v1179_v57, 0.0  ;;  %v1211_v61 = vmul.f32 0.2, %v1179_v57 }
 0x16b   :  { %v1226_v1 = vsel %vm1194_vm11, %v1178_v52, %v1210_v59 }
 0x16c   :  { %v2037_v62 = vadd.f32 %v2036_v43, %v1146_v7  ;;  %v2042_v0 = vadd.f32 %v2804_v37, %v1820_v20  ;;  %v1227_v51 = vsel %vm1195_vm12, %v1179_v57, %v1211_v61 }
 0x16d   :  { %v1237_v2 = vpack.c.bf16 %v1227_v51, %v1226_v1 }
 0x16e   :  { %v1180_v3 = vadd.f32 %v2037_v62, %v2815_v60  ;;  %v2043_v6 = vadd.f32 %v2042_v0, %v1149_v14  ;;  %v1821_v8 = vpop.f32.mrb[60].mxu1 }
 0x16f   :  { %v1822_v9 = vpop.f32.mrb[61].mxu1  ;;  %1930 = vmatmul.mubr.bf16.gmra.mrb[56].mxu0 %v1237_v2 }
 0x170   :  { %v1181_v12 = vadd.f32 %v2043_v6, %v2815_v60  ;;  %v1823_v10 = vadd.f32 %v1822_v9, %v1821_v8  ;;  %v1824_v13 = vpop.f32.mrb[62].mxu1  ;;  %v1212_v31 = vmul.f32 0.2, %v1180_v3  ;;  %vm1196_vm13 = vcmp.gt.f32.partialorder %v1180_v3, 0.0 }
 0x171   :  { %v1825_v49 = vpop.f32.mrb[63].mxu1 }
 0x172   :  { %v2033_v7 = vadd.f32 %v2806_v47, %v1823_v10  ;;  %v1826_v17 = vadd.f32 %v1825_v49, %v1824_v13  ;;  %vm1197_vm14 = vcmp.gt.f32.partialorder %v1181_v12, 0.0  ;;  %v1213_v37 = vmul.f32 0.2, %v1181_v12 }
 0x173   :  { %v1228_v14 = vsel %vm1196_vm13, %v1180_v3, %v1212_v31 }
 0x174   :  { %v2034_v16 = vadd.f32 %v2033_v7, %v2833_v5  ;;  %v2039_v18 = vadd.f32 %v2808_v53, %v1826_v17  ;;  %v1229_v54 = vsel %vm1197_vm14, %v1181_v12, %v1213_v37  ;;  %v2150_v5 = vmov 0.0|0.0  }
 0x175   :  { %v1238_v19 = vpack.c.bf16 %v1229_v54, %v1228_v14  ;;  %1972 = vmatprep.subr.bf16.mxu1 %v2150_v5  ;;  %v2152_v53 = vmov 0.0  }
 0x176   :  { %v1182_v23 = vadd.f32 %v2034_v16, %v2815_v60  ;;  %v2040_v24 = vadd.f32 %v2039_v18, %v2836_v11  ;;  %1969 = vmatprep.mubr.msk.f32.mxu1 %vm2151_vm1, %v2152_v53  ;;  %v2863_v11 = vld [vmem:[%s2912_s6] ss:$0 sm:$0xff] }
 0x177   :  { %1933 = vmatprep.mubr.bf16.mxu0 %v1238_v19 }
 0x178   :  { %v1183_v25 = vadd.f32 %v2040_v24, %v2815_v60  ;;  %v1214_v27 = vmul.f32 0.2, %v1182_v23  ;;  %vm1198_vm15 = vcmp.gt.f32.partialorder %v1182_v23, 0.0 }
 0x17a   :  { %vm1199_vm0 = vcmp.gt.f32.partialorder %v1183_v25, 0.0  ;;  %v1215_v47 = vmul.f32 0.2, %v1183_v25  ;;  %v1230_v22 = vsel %vm1198_vm15, %v1182_v23, %v1214_v27 }
 0x17c   :  { %v1231_v28 = vsel %vm1199_vm0, %v1183_v25, %v1215_v47 }
 0x17d   :  { %v1239_v29 = vpack.c.bf16 %v1231_v28, %v1230_v22 }
 0x17f   :  { %1934 = vmatmul.mubr.bf16.gmra.mrb[60].mxu0 %v1239_v29 }
 0x222   :  { %v1923_v60 = vpop.f32.mrb[48].mxu0 }
 0x223   :  { %v1354_v30 = vadd.f32 %v1923_v60, %v2863_v11  ;;  %v1345_v21 = vpop.f32.mrb[49].mxu0 }
 0x224   :  { %v1346_v32 = vadd.f32 %v2863_v11, %v1345_v21  ;;  %v1924_v33 = vpop.f32.mrb[50].mxu0 }
 0x225   :  { %v1426_v34 = vmul.f32 0.2, %v1354_v30  ;;  %v1357_v36 = vadd.f32 %v1924_v33, %v2863_v11  ;;  %v1348_v26 = vpop.f32.mrb[51].mxu0  ;;  %vm1410_vm2 = vcmp.gt.f32.partialorder %v1354_v30, 0.0 }
 0x226   :  { %v1424_v38 = vmul.f32 0.2, %v1346_v32  ;;  %v1349_v63 = vadd.f32 %v2863_v11, %v1348_v26  ;;  %vm1408_vm3 = vcmp.gt.f32.partialorder %v1346_v32, 0.0 }
 0x227   :  { %vm1411_vm4 = vcmp.gt.f32.partialorder %v1357_v36, 0.0  ;;  %v1427_v39 = vmul.f32 0.2, %v1357_v36  ;;  %v1442_v42 = vsel %vm1410_vm2, %v1354_v30, %v1426_v34 }
 0x228   :  { %vm1409_vm5 = vcmp.gt.f32.partialorder %v1349_v63, 0.0  ;;  %v1425_v41 = vmul.f32 0.2, %v1349_v63  ;;  %v1440_v44 = vsel %vm1408_vm3, %v1346_v32, %v1424_v38 }
 0x229   :  { %v1443_v4 = vsel %vm1411_vm4, %v1357_v36, %v1427_v39  ;;  %v1528_v39 = vstv %s2914_s8 }
 0x22a   :  { %v1976_v45 = vpack.c.bf16 %v1443_v4, %v1442_v42  ;;  %v1441_v46 = vsel %vm1409_vm5, %v1349_v63, %v1425_v41 }
 0x22b   :  { %v1973_v48 = vpack.c.bf16 %v1441_v46, %v1440_v44 }
 0x22d   :  { %1974 = vmatpush3.bf16.xpose.msra.mxu1 %v1973_v48 }
 0x22e   :  { %1975 = vmatprep.subr.bf16.mxu1 %v2150_v5 }
 0x232   :  { %v1927_v50 = vpop.f32.mrb[52].mxu0 }
 0x233   :  { %v1370_v52 = vadd.f32 %v1927_v50, %v2863_v11  ;;  %v1361_v55 = vpop.f32.mrb[53].mxu0 }
 0x234   :  { %v1362_v56 = vadd.f32 %v2863_v11, %v1361_v55  ;;  %v1928_v35 = vpop.f32.mrb[54].mxu0 }
 0x235   :  { %v1430_v57 = vmul.f32 0.2, %v1370_v52  ;;  %v1373_v15 = vadd.f32 %v1928_v35, %v2863_v11  ;;  %v1364_v58 = vpop.f32.mrb[55].mxu0  ;;  %vm1414_vm6 = vcmp.gt.f32.partialorder %v1370_v52, 0.0  ;;  %1977 = vmatpush3.bf16.xpose.msra.mxu1 %v1976_v45 }
 0x236   :  { %v1428_v59 = vmul.f32 0.2, %v1362_v56  ;;  %v1365_v40 = vadd.f32 %v2863_v11, %v1364_v58  ;;  %vm1412_vm7 = vcmp.gt.f32.partialorder %v1362_v56, 0.0  ;;  %1978 = vmatprep.subr.bf16.mxu1 %v2150_v5 }
 0x237   :  { %vm1415_vm8 = vcmp.gt.f32.partialorder %v1373_v15, 0.0  ;;  %v1431_v43 = vmul.f32 0.2, %v1373_v15  ;;  %v1446_v61 = vsel %vm1414_vm6, %v1370_v52, %v1430_v57 }
 0x238   :  { %vm1413_vm9 = vcmp.gt.f32.partialorder %v1365_v40, 0.0  ;;  %v1429_v20 = vmul.f32 0.2, %v1365_v40  ;;  %v1444_v0 = vsel %vm1412_vm7, %v1362_v56, %v1428_v59 }
 0x239   :  { %v1447_v62 = vsel %vm1415_vm8, %v1373_v15, %v1431_v43 }
 0x23a   :  { %v1982_v1 = vpack.c.bf16 %v1447_v62, %v1446_v61  ;;  %v1445_v51 = vsel %vm1413_vm9, %v1365_v40, %v1429_v20 }
 0x23b   :  { %v1979_v2 = vpack.c.bf16 %v1445_v51, %v1444_v0 }
 0x23d   :  { %1980 = vmatpush3.bf16.xpose.msra.mxu1 %v1979_v2 }
 0x23e   :  { %1981 = vmatprep.subr.bf16.mxu1 %v2150_v5 }
 0x242   :  { %v1931_v3 = vpop.f32.mrb[56].mxu0 }
 0x243   :  { %v1386_v6 = vadd.f32 %v1931_v3, %v2863_v11  ;;  %v1377_v8 = vpop.f32.mrb[57].mxu0 }
 0x244   :  { %v1378_v9 = vadd.f32 %v2863_v11, %v1377_v8  ;;  %v1932_v12 = vpop.f32.mrb[58].mxu0 }
 0x245   :  { %v1434_v10 = vmul.f32 0.2, %v1386_v6  ;;  %v1389_v13 = vadd.f32 %v1932_v12, %v2863_v11  ;;  %v1380_v31 = vpop.f32.mrb[59].mxu0  ;;  %vm1418_vm10 = vcmp.gt.f32.partialorder %v1386_v6, 0.0  ;;  %1983 = vmatpush3.bf16.xpose.msra.mxu1 %v1982_v1 }
 0x246   :  { %v1432_v49 = vmul.f32 0.2, %v1378_v9  ;;  %v1381_v7 = vadd.f32 %v2863_v11, %v1380_v31  ;;  %vm1416_vm11 = vcmp.gt.f32.partialorder %v1378_v9, 0.0  ;;  %1984 = vmatprep.subr.bf16.mxu1 %v2150_v5 }
 0x247   :  { %vm1419_vm12 = vcmp.gt.f32.partialorder %v1389_v13, 0.0  ;;  %v1435_v17 = vmul.f32 0.2, %v1389_v13  ;;  %v1450_v16 = vsel %vm1418_vm10, %v1386_v6, %v1434_v10 }
 0x248   :  { %vm1417_vm13 = vcmp.gt.f32.partialorder %v1381_v7, 0.0  ;;  %v1433_v37 = vmul.f32 0.2, %v1381_v7  ;;  %v1448_v14 = vsel %vm1416_vm11, %v1378_v9, %v1432_v49 }
 0x249   :  { %v1451_v18 = vsel %vm1419_vm12, %v1389_v13, %v1435_v17 }
 0x24a   :  { %v1988_v54 = vpack.c.bf16 %v1451_v18, %v1450_v16  ;;  %v1449_v19 = vsel %vm1417_vm13, %v1381_v7, %v1433_v37 }
 0x24b   :  { %v1985_v23 = vpack.c.bf16 %v1449_v19, %v1448_v14 }
 0x24d   :  { %1986 = vmatpush3.bf16.xpose.msra.mxu1 %v1985_v23 }
 0x24e   :  { %1987 = vmatprep.subr.bf16.mxu1 %v2150_v5 }
 0x252   :  { %v1935_v24 = vpop.f32.mrb[60].mxu0 }
 0x253   :  { %v1402_v25 = vadd.f32 %v1935_v24, %v2863_v11  ;;  %v1393_v27 = vpop.f32.mrb[61].mxu0 }
 0x254   :  { %v1394_v47 = vadd.f32 %v2863_v11, %v1393_v27  ;;  %v1936_v22 = vpop.f32.mrb[62].mxu0 }
 0x255   :  { %v1438_v28 = vmul.f32 0.2, %v1402_v25  ;;  %v1405_v29 = vadd.f32 %v1936_v22, %v2863_v11  ;;  %v1396_v53 = vpop.f32.mrb[63].mxu0  ;;  %vm1422_vm14 = vcmp.gt.f32.partialorder %v1402_v25, 0.0  ;;  %1989 = vmatpush3.bf16.xpose.msra.mxu1 %v1988_v54 }
 0x256   :  { %v1436_v60 = vmul.f32 0.2, %v1394_v47  ;;  %v1397_v30 = vadd.f32 %v2863_v11, %v1396_v53  ;;  %vm1420_vm15 = vcmp.gt.f32.partialorder %v1394_v47, 0.0  ;;  %1990 = vmatprep.subr.bf16.mxu1 %v2150_v5  ;;  %v1456_v11 = vld [vmem:[%s2913_s7] sm:$0xff]  ;;  %s2126_s7 = scalar_lea.vmem %s1543_s15, 16 }
 0x257   :  { %vm1423_vm0 = vcmp.gt.f32.partialorder %v1405_v29, 0.0  ;;  %v1439_v21 = vmul.f32 0.2, %v1405_v29  ;;  %v1454_v33 = vsel %vm1422_vm14, %v1402_v25, %v1438_v28  ;;  %p2127_p0 = scmp.ne.s32.totalorder %s1543_s15, %s2126_s7  ;;  %p2132_p2 = scmp.lt.s32.totalorder %s2130_s2, %s2126_s7 }
 0x258   :  { %vm1421_vm1 = vcmp.gt.f32.partialorder %v1397_v30, 0.0  ;;  %v1437_v32 = vmul.f32 0.2, %v1397_v30  ;;  %v1452_v36 = vsel %vm1420_vm15, %v1394_v47, %v1436_v60 }
 0x259   :  { %v1455_v34 = vsel %vm1423_vm0, %v1405_v29, %v1439_v21  ;;  %p2133_p3 = por %p2132_p2, %p2131_p1 }
 0x25a   :  { %v1994_v26 = vpack.c.bf16 %v1455_v34, %v1454_v33  ;;  %v1453_v38 = vsel %vm1421_vm1, %v1397_v30, %v1437_v32 }
 0x25b   :  { %v1991_v63 = vpack.c.bf16 %v1453_v38, %v1452_v36  ;;  %p2134_p4 = pnand %p2133_p3, %p2127_p0 }
 0x25d   :  { %1992 = vmatpush3.bf16.xpose.msra.mxu1 %v1991_v63 }
 0x25e   :  { %1993 = vmatprep.subr.bf16.mxu1 %v2150_v5 }
 0x265   :  { %1995 = vmatpush3.bf16.xpose.msra.mxu1 %v1994_v26 }
 0x26c   :  { %1970 = vmatmul.mubr.f32.vlgmr.msra.gmra.mrb[64].mxu1 %v1456_v11 }
 0x33f   :  { %v1523_v41 = vpop.f32.mrb[64].mxu1 }
 0x340   :  { %v1529_v42 = vadd.f32 %v1528_v39, %v1523_v41  ;;  %v1971_v4 = vpop.f32.mrb[65].mxu1 }
 0x342   :  { %v1530_v44 = vsub.f32 0.0, %v1529_v42 }
 0x344   :  { %v1531_v45 = vmul.f32 1.442695, %v1530_v44 }
 0x346   :  { %2122 = vpow2.f32 %v1531_v45 }
 0x350   :  { %v2123_v46 = vpop.eup %2122 }
 0x351   :  { %v1533_v48 = vadd.f32 1.0, %v2123_v46 }
 0x353   :  { %2124 = vrcp.f32 %v1533_v48 }
 0x35d   :  { %v2125_v5 = vpop.eup %2124 }
 0x35e   :  { %1535 = vst [vmem:[#allocation3] sm:$0x1] %v2125_v5 }
 0x35f   :  { %2137 = shalt.err (!%p2134_p4)
}
 0x360   :  { %s2138_s17 = scalar_lea.hbm %s2915_s9, 16 }
 0x361   :  { %p2139_p5 = scmp.ne.s32.totalorder %s2915_s9, %s2138_s17  ;;  %p2142_p6 = scmp.lt.u32.totalorder %s2138_s17, %s2915_s9 }
 0x363   :  { %p2144_p7 = pnand %p2142_p6, %p2139_p5 }
 0x365   :  { %2147 = shalt.err (!%p2144_p7)
}
 0x366   :  { %1545 = dma.vmem_to_hbm [thread:$0]  %s1543_s15, 16, %s2915_s9, [#allocation4]  }
 0x367   :  { %2148 = dma.done.wait [#allocation4], 16  }
 0x368   :  { %2149 = vsyncadd [#allocation4], 4294967280 }
 0x369   :  { %1549 = vsyncpa [#allocation4], 1 }

</bundles_post_ra>
